<compile_context>
chip_gen: v7x
topology: tpu7x:2x2x1
jax: 0.10.0
libtpu: 0.0.40
codegen_flags: <defaults>
</compile_context>

<pallas_src>
import functools
import math

import jax
import jax.numpy as jnp
from jax.experimental import pallas as pl
from jax.experimental.pallas import tpu as pltpu

EPS = 1e-5


def _pick_tn(n):
    """Output-channel tile: 256 (MXU-friendly, megacore-splittable) when possible."""
    for t in (256, 128):
        if n % t == 0:
            return t
    return n


# ------------- fused conv (matmul) + BatchNorm2d + residual + ReLU -------------

def _conv_bn_kernel(relu, has_res, x_ref, w_ref, g_ref, b_ref, *rest):
    """One grid step covers ALL output rows for one TN-wide channel tile, so the
    per-channel batch statistics are complete in-tile and BN / residual / ReLU
    fuse directly behind the MXU matmuls.  Single bf16 store of the output."""
    if has_res:
        res_ref, o_ref = rest
    else:
        (o_ref,) = rest

    n_taps = x_ref.shape[0]
    acc = jnp.dot(x_ref[0], w_ref[0], preferred_element_type=jnp.float32)
    for t in range(1, n_taps):
        acc = acc + jnp.dot(x_ref[t], w_ref[t], preferred_element_type=jnp.float32)

    # BatchNorm over all rows (batch * spatial); centered two-pass variance
    # (avoids the E[x^2]-E[x]^2 cancellation flagged in review).
    mean = jnp.mean(acc, axis=0, keepdims=True)
    var = jnp.mean(jnp.square(acc - mean), axis=0, keepdims=True)
    scale = g_ref[...] * jax.lax.rsqrt(var + EPS)
    shift = b_ref[...] - mean * scale
    out = acc * scale + shift
    if has_res:
        out = out + res_ref[...].astype(jnp.float32)
    if relu:
        out = jnp.maximum(out, 0.0)
    o_ref[...] = out.astype(o_ref.dtype)


@functools.partial(jax.jit, static_argnames=("kh", "kw", "stride", "pad", "relu"))
def conv_bn(x, w, gamma, beta, residual=None, *, kh, kw, stride, pad, relu):
    """conv (no bias) + BatchNorm2d (batch stats) [+ fused residual add] [+ ReLU].

    x: [B, H, W, Cin] bf16 (NHWC).  w: [kh*kw, Cin, Cout] bf16.
    Returns [B, Ho, Wo, Cout] bf16.
    """
    B, H, W, Cin = x.shape
    Cout = w.shape[-1]
    Ho = (H + 2 * pad - kh) // stride + 1
    Wo = (W + 2 * pad - kw) // stride + 1
    M = B * Ho * Wo

    if (kh, kw) == (1, 1):
        # 1x1 conv (stride 1 or 2): plain matmul over a flat (rows, Cin) slab.
        xt = x[:, ::stride, ::stride, :].reshape(1, M, Cin)
        wt = w
    else:
        xp = jnp.pad(x, ((0, 0), (pad, pad), (pad, pad), (0, 0)))
        taps = [xp[:, di:di + stride * (Ho - 1) + 1:stride,
                   dj:dj + stride * (Wo - 1) + 1:stride, :].reshape(M, Cin)
                for di in range(kh) for dj in range(kw)]
        if Cin < 8:
            # 7x7 stem (Cin=3): too narrow for the lane dim as separate taps;
            # concat taps along channels (im2col) -> one K=kh*kw*Cin matmul.
            xt = jnp.concatenate(taps, axis=-1)[None]          # (1, M, kh*kw*Cin)
            wt = w.reshape(1, kh * kw * Cin, Cout)
        else:
            # 3x3 convs (stride 1 and 2): lane-dense (M, Cin) tap slabs, all
            # blocks tile-aligned; kernel accumulates the 9 tap matmuls.
            xt = jnp.stack(taps, axis=0)                        # (kh*kw, M, Cin)
            wt = w

    T, _, K = xt.shape
    TN = _pick_tn(Cout)
    kernel = functools.partial(_conv_bn_kernel, relu, residual is not None)
    in_specs = [pl.BlockSpec((T, M, K), lambda j: (0, 0, 0)),
                pl.BlockSpec((T, K, TN), lambda j: (0, 0, j)),
                pl.BlockSpec((1, TN), lambda j: (0, j)),
                pl.BlockSpec((1, TN), lambda j: (0, j))]
    args = [xt, wt, gamma, beta]
    if residual is not None:
        in_specs.append(pl.BlockSpec((M, TN), lambda j: (0, j)))
        args.append(residual.reshape(M, Cout))

    y = pl.pallas_call(
        kernel,
        out_shape=jax.ShapeDtypeStruct((M, Cout), jnp.bfloat16),
        grid=(Cout // TN,),
        in_specs=in_specs,
        out_specs=pl.BlockSpec((M, TN), lambda j: (0, j)),
        compiler_params=pltpu.CompilerParams(
            dimension_semantics=("parallel",)),
    )(*args)
    return y.reshape(B, Ho, Wo, Cout)


# --------------------------- 3x3 / stride-2 maxpool ----------------------------

def _maxpool_kernel(ee_ref, eo_ref, oe_ref, oo_ref, o_ref):
    Ho, Wo = o_ref.shape[1], o_ref.shape[2]
    planes = {(0, 0): ee_ref, (0, 1): eo_ref, (1, 0): oe_ref, (1, 1): oo_ref}
    result = None
    for di in range(3):
        for dj in range(3):
            ref = planes[(di % 2, dj % 2)]
            a, b = di // 2, dj // 2
            v = ref[0, a:a + Ho, b:b + Wo, :]
            result = v if result is None else jnp.maximum(result, v)
    o_ref[...] = result[None]


@jax.jit
def maxpool_3x3_s2(x):
    """3x3 / stride 2 / pad 1 max-pool via parity planes (no 9x HBM stack)."""
    B, H, W, C = x.shape
    Ho = (H - 1) // 2 + 1
    Wo = (W - 1) // 2 + 1
    xp = jnp.pad(x, ((0, 0), (1, 1), (1, 1), (0, 0)), constant_values=-jnp.inf)
    ee = xp[:, 0:2 * Ho + 1:2, 0:2 * Wo + 1:2, :]
    eo = xp[:, 0:2 * Ho + 1:2, 1:2 * Wo:2, :]
    oe = xp[:, 1:2 * Ho:2, 0:2 * Wo + 1:2, :]
    oo = xp[:, 1:2 * Ho:2, 1:2 * Wo:2, :]
    in_specs = [pl.BlockSpec((1,) + p.shape[1:], lambda b: (b, 0, 0, 0))
                for p in (ee, eo, oe, oo)]
    return pl.pallas_call(
        _maxpool_kernel,
        out_shape=jax.ShapeDtypeStruct((B, Ho, Wo, C), x.dtype),
        grid=(B,),
        in_specs=in_specs,
        out_specs=pl.BlockSpec((1, Ho, Wo, C), lambda b: (b, 0, 0, 0)),
        compiler_params=pltpu.CompilerParams(dimension_semantics=("parallel",)),
    )(ee, eo, oe, oo)


# ------------------- head: avgpool + embed Linear + BatchNorm1d ----------------

def _head_kernel(x_ref, w_ref, b_ref, g_ref, be_ref, o_ref):
    feat = jnp.mean(x_ref[...].astype(jnp.float32), axis=1)            # [B, C]
    y = jnp.dot(feat, w_ref[...], preferred_element_type=jnp.float32) + b_ref[...]
    mean = jnp.mean(y, axis=0, keepdims=True)
    var = jnp.mean(jnp.square(y - mean), axis=0, keepdims=True)
    o_ref[...] = (y - mean) * jax.lax.rsqrt(var + EPS) * g_ref[...] + be_ref[...]


@jax.jit
def _head_call(x, w, b, g, be):
    # Tiny (B=2, E=32) -> single-block kernel; the trunk dominates runtime.
    B, H, W, C = x.shape
    x3 = x.reshape(B, H * W, C)
    E = w.shape[1]
    return pl.pallas_call(
        _head_kernel,
        out_shape=jax.ShapeDtypeStruct((B, E), jnp.float32),
        grid=(1,),
        in_specs=[pl.BlockSpec((B, H * W, C), lambda i: (0, 0, 0)),
                  pl.BlockSpec((C, E), lambda i: (0, 0)),
                  pl.BlockSpec((1, E), lambda i: (0, 0)),
                  pl.BlockSpec((1, E), lambda i: (0, 0)),
                  pl.BlockSpec((1, E), lambda i: (0, 0))],
        out_specs=pl.BlockSpec((B, E), lambda i: (0, 0)),
    )(x3, w, b, g, be)


# --------------------------------- glue ---------------------------------------

def bottleneck(x, p):
    s = p["stride"]
    out = conv_bn(x, p["w1"], p["g1"], p["b1"],
                  kh=1, kw=1, stride=1, pad=0, relu=True)
    out = conv_bn(out, p["w2"], p["g2"], p["b2"],
                  kh=3, kw=3, stride=s, pad=1, relu=True)
    if "wd" in p:
        identity = conv_bn(x, p["wd"], p["gd"], p["bd"],
                           kh=1, kw=1, stride=s, pad=0, relu=False)
    else:
        identity = x
    # conv3 + bn3 with the residual add + ReLU fused into the same kernel.
    return conv_bn(out, p["w3"], p["g3"], p["b3"],
                   kh=1, kw=1, stride=1, pad=0, relu=True, residual=identity)


def encoder_forward(images_nchw, params):
    x = jnp.transpose(images_nchw, (0, 2, 3, 1)).astype(jnp.bfloat16)  # NCHW -> NHWC bf16
    st = params["stem"]
    x = conv_bn(x, st["w"], st["g"], st["b"],
                kh=7, kw=7, stride=2, pad=3, relu=True)                # conv1 + bn1 + relu
    x = maxpool_3x3_s2(x)                                              # maxpool
    for blocks in params["layers"]:                                    # layer1..layer4
        for blk in blocks:
            x = bottleneck(x, blk)
    # avgpool + embed Linear + BatchNorm1d
    return _head_call(x, params["embed_w"], params["embed_b"],
                      params["bn_g"], params["bn_b"])


# ------------------------------ parameters -------------------------------------

def init_params(key, embed_size):
    state = {"key": key}

    def next_key():
        state["key"], sub = jax.random.split(state["key"])
        return sub

    def conv_w(kh, kw, cin, cout):
        fan_in = kh * kw * cin
        w = jax.random.normal(next_key(), (kh * kw, cin, cout), jnp.float32)
        return (w / math.sqrt(fan_in)).astype(jnp.bfloat16)

    def bn(c):
        return jnp.ones((1, c), jnp.float32), jnp.zeros((1, c), jnp.float32)

    params = {}
    g, b = bn(64)
    params["stem"] = dict(w=conv_w(7, 7, 3, 64), g=g, b=b)

    # ResNet-50: (blocks, bottleneck width, out channels, stride)
    layer_cfg = [(3, 64, 256, 1), (4, 128, 512, 2), (6, 256, 1024, 2), (3, 512, 2048, 2)]
    inplanes = 64
    layers = []
    for nblocks, width, outp, stride in layer_cfg:
        blocks = []
        for i in range(nblocks):
            s = stride if i == 0 else 1
            blk = {"stride": s}
            blk["w1"] = conv_w(1, 1, inplanes, width); blk["g1"], blk["b1"] = bn(width)
            blk["w2"] = conv_w(3, 3, width, width);    blk["g2"], blk["b2"] = bn(width)
            blk["w3"] = conv_w(1, 1, width, outp);     blk["g3"], blk["b3"] = bn(outp)
            if i == 0:
                blk["wd"] = conv_w(1, 1, inplanes, outp)
                blk["gd"], blk["bd"] = bn(outp)
            blocks.append(blk)
            inplanes = outp
        layers.append(blocks)
    params["layers"] = layers

    params["embed_w"] = (jax.random.normal(next_key(), (2048, embed_size), jnp.float32)
                         / math.sqrt(2048.0))
    params["embed_b"] = jnp.zeros((1, embed_size), jnp.float32)
    params["bn_g"] = jnp.ones((1, embed_size), jnp.float32)
    params["bn_b"] = jnp.zeros((1, embed_size), jnp.float32)
    return params


# ---------------------------------- main ----------------------------------------

if __name__ == "__main__":
    embed_size = 32
    key = jax.random.PRNGKey(0)
    k_img, k_par = jax.random.split(key)
    # Smallest ResNet-50-compatible spatial size that survives 5 downsamples.
    images = jax.random.normal(k_img, (2, 3, 32, 32), jnp.float32)     # NCHW, like PyTorch
    params = init_params(k_par, embed_size)

    out = encoder_forward(images, params)
    out = jax.block_until_ready(out)
    assert out.shape == (2, embed_size), out.shape
    assert bool(jnp.all(jnp.isfinite(out)))
    print("KERNEL_OK")
</pallas_src>

<mosaic_0001>
module attributes {stable_mosaic.version = 11 : i64} {
  func.func @_conv_bn_kernel(%arg0: i32, %arg1: memref<1x512x147xbf16, #tpu.memory_space<vmem>>, %arg2: memref<1x147x64xbf16, #tpu.memory_space<vmem>>, %arg3: memref<1x64xf32, #tpu.memory_space<vmem>>, %arg4: memref<1x64xf32, #tpu.memory_space<vmem>>, %arg5: memref<512x64xbf16, #tpu.memory_space<vmem>>) attributes {dimension_semantics = [#tpu.dimension_semantics<parallel>], iteration_bounds = array<i64: 1>, scalar_prefetch = 0 : i64, scratch_operands = 0 : i64, tpu.core_type = #tpu.core_type<tc>, window_params = [{pipeline_mode = #tpu.pipeline_mode<synchronous>, transform_indices = @transform_0, window_bounds = array<i64: 1, 512, 147>}, {transform_indices = @transform_1, window_bounds = array<i64: 1, 147, 64>}, {transform_indices = @transform_2, window_bounds = array<i64: 1, 64>}, {transform_indices = @transform_3, window_bounds = array<i64: 1, 64>}, {transform_indices = @transform_4, window_bounds = array<i64: 512, 64>}]} {
    %c0 = arith.constant 0 : index
    %c0_0 = arith.constant 0 : index
    %c0_1 = arith.constant 0 : index
    %0 = vector.load %arg1[%c0, %c0_0, %c0_1] : memref<1x512x147xbf16, #tpu.memory_space<vmem>>, vector<1x512x147xbf16>
    %1 = vector.shape_cast %0 : vector<1x512x147xbf16> to vector<512x147xbf16>
    %c0_2 = arith.constant 0 : index
    %c0_3 = arith.constant 0 : index
    %c0_4 = arith.constant 0 : index
    %2 = vector.load %arg2[%c0_2, %c0_3, %c0_4] : memref<1x147x64xbf16, #tpu.memory_space<vmem>>, vector<1x147x64xbf16>
    %3 = vector.shape_cast %2 : vector<1x147x64xbf16> to vector<147x64xbf16>
    %cst = arith.constant dense<0.000000e+00> : vector<512x64xf32>
    %4 = tpu.matmul %1, %3, %cst {dimension_numbers = #tpu.dot_dimension_numbers<[1], [0], [0], [1], [0, 0, 1, 1], [], []>} : vector<512x147xbf16>, vector<147x64xbf16>, vector<512x64xf32> -> vector<512x64xf32>
    %cst_5 = arith.constant dense<0.000000e+00> : vector<64xf32>
    %5 = vector.multi_reduction <add>, %4, %cst_5 [0] : vector<512x64xf32> to vector<64xf32>
    %6 = vector.shape_cast %5 : vector<64xf32> to vector<1x64xf32>
    %cst_6 = arith.constant 5.120000e+02 : f32
    %7 = vector.broadcast %cst_6 : f32 to vector<1x64xf32>
    %8 = arith.divf %6, %7 : vector<1x64xf32>
    %9 = vector.broadcast %8 : vector<1x64xf32> to vector<512x64xf32>
    %10 = arith.subf %4, %9 : vector<512x64xf32>
    %11 = arith.mulf %10, %10 : vector<512x64xf32>
    %cst_7 = arith.constant dense<0.000000e+00> : vector<64xf32>
    %12 = vector.multi_reduction <add>, %11, %cst_7 [0] : vector<512x64xf32> to vector<64xf32>
    %13 = vector.shape_cast %12 : vector<64xf32> to vector<1x64xf32>
    %cst_8 = arith.constant 5.120000e+02 : f32
    %14 = vector.broadcast %cst_8 : f32 to vector<1x64xf32>
    %15 = arith.divf %13, %14 : vector<1x64xf32>
    %c0_9 = arith.constant 0 : index
    %c0_10 = arith.constant 0 : index
    %16 = vector.load %arg3[%c0_9, %c0_10] : memref<1x64xf32, #tpu.memory_space<vmem>>, vector<1x64xf32>
    %cst_11 = arith.constant 9.99999974E-6 : f32
    %17 = vector.broadcast %cst_11 : f32 to vector<1x64xf32>
    %18 = arith.addf %15, %17 : vector<1x64xf32>
    %19 = math.rsqrt %18 : vector<1x64xf32>
    %20 = arith.mulf %16, %19 : vector<1x64xf32>
    %c0_12 = arith.constant 0 : index
    %c0_13 = arith.constant 0 : index
    %21 = vector.load %arg4[%c0_12, %c0_13] : memref<1x64xf32, #tpu.memory_space<vmem>>, vector<1x64xf32>
    %22 = arith.mulf %8, %20 : vector<1x64xf32>
    %23 = arith.subf %21, %22 : vector<1x64xf32>
    %24 = vector.broadcast %20 : vector<1x64xf32> to vector<512x64xf32>
    %25 = arith.mulf %4, %24 : vector<512x64xf32>
    %26 = vector.broadcast %23 : vector<1x64xf32> to vector<512x64xf32>
    %27 = arith.addf %25, %26 : vector<512x64xf32>
    %cst_14 = arith.constant 0.000000e+00 : f32
    %28 = vector.broadcast %cst_14 : f32 to vector<512x64xf32>
    %29 = arith.maximumf %27, %28 : vector<512x64xf32>
    %30 = arith.truncf %29 : vector<512x64xf32> to vector<512x64xbf16>
    %c0_15 = arith.constant 0 : index
    %c0_16 = arith.constant 0 : index
    %31 = vector.load %arg5[%c0_15, %c0_16] : memref<512x64xbf16, #tpu.memory_space<vmem>>, vector<512x64xbf16>
    tpu.vector_store %arg5[%c0_15, %c0_16], %30 {strides = array<i32>} : memref<512x64xbf16, #tpu.memory_space<vmem>>, vector<512x64xbf16>,
    return
  }
  func.func @transform_0(%arg0: i32) -> (i32, i32, i32) {
    %c0_i32 = arith.constant 0 : i32
    %c0_i32_0 = arith.constant 0 : i32
    %c0_i32_1 = arith.constant 0 : i32
    %c0_i32_2 = arith.constant 0 : i32
    return %c0_i32, %c0_i32_0, %c0_i32_1 : i32, i32, i32
  }
  func.func @transform_1(%arg0: i32) -> (i32, i32, i32) {
    %c0_i32 = arith.constant 0 : i32
    %c0_i32_0 = arith.constant 0 : i32
    %c0_i32_1 = arith.constant 0 : i32
    return %c0_i32, %c0_i32_0, %arg0 : i32, i32, i32
  }
  func.func @transform_2(%arg0: i32) -> (i32, i32) {
    %c0_i32 = arith.constant 0 : i32
    %c0_i32_0 = arith.constant 0 : i32
    return %c0_i32, %arg0 : i32, i32
  }
  func.func @transform_3(%arg0: i32) -> (i32, i32) {
    %c0_i32 = arith.constant 0 : i32
    %c0_i32_0 = arith.constant 0 : i32
    return %c0_i32, %arg0 : i32, i32
  }
  func.func @transform_4(%arg0: i32) -> (i32, i32) {
    %c0_i32 = arith.constant 0 : i32
    %c0_i32_0 = arith.constant 0 : i32
    return %c0_i32, %arg0 : i32, i32
  }
}

</mosaic_0001>

<bundles_post_ra>
// kernel: conv_bn.1
= control target key start
LH: loop header
LB: loop body
LE: loop exit
PB: predicated region body
PF: predicated region fallthrough
CT: control target
= control target key end

     0   :  { %v2177_v1 = vmov 0   ;;  %vm447_vm0 = vcmask 154624   ;;  %vm544_vm1 = vcmask 1040384   ;;  %vm545_vm2 = vcmask 1041408   ;;  %s3737_s0 = inlined_call_operand.vmem [shape: bf16[1,512,147], index: 0, kind: input, shape index: {}]   ;;  %s3738_s1 = inlined_call_operand.vmem [shape: bf16[1,147,64], index: 1, kind: input, shape index: {}]   ;;  %s3739_s2 = inlined_call_operand.vmem [shape: f32[1,64], index: 2, kind: input, shape index: {}]   ;;  %s3740_s3 = inlined_call_operand.vmem [shape: f32[1,64], index: 3, kind: input, shape index: {}]   ;;  %s3741_s4 = inlined_call_operand.hbm [shape: bf16[512,64], index: 4, kind: output, shape index: {}]  }
   0x1   :  { %v2045_v0 = vld [vmem:[%s3738_s1] sm:$0xff]   ;;  %551 = vmatprep.subr.bf16.mxu0 %v2177_v1  ;;  %2020 = vmatprep.subr.bf16.mxu1 %v2177_v1  ;;  %v2046_v2 = vld [vmem:[%s3738_s1 + $0x8] sm:$0xff]   ;;  %v2047_v3 = vld [vmem:[%s3738_s1 + $0x10] sm:$0xff]   ;;  %v2178_v11 = vmov 65535  }
   0x2   :  { %552 = vmatpush1.bf16.msra.mxu0 %v2045_v0  ;;  %2030 = vmatpush1.bf16.msra.mxu1 %v2045_v0  ;;  %v2048_v4 = vld [vmem:[%s3738_s1 + $0x18] sm:$0xff]   ;;  %v2057_v5 = vld [vmem:[%s3737_s0 + $0x4] ss:$8 sps:$4 sm:$0xff]   ;;  %v2051_v9 = vld [vmem:[%s3738_s1 + $0x30] sm:$0xff]   ;;  %v546_v12 = vsel %vm544_vm1, 4294967295, %v2178_v11 }
   0x3   :  { %553 = vmatprep.subr.bf16.mxu0 %v2177_v1  ;;  %2021 = vmatprep.subr.bf16.mxu1 %v2177_v1  ;;  %v2049_v6 = vld [vmem:[%s3738_s1 + $0x20] sm:$0xff]   ;;  %v2050_v7 = vld [vmem:[%s3738_s1 + $0x28] sm:$0xff]   ;;  %v2052_v10 = vld [vmem:[%s3738_s1 + $0x38] sm:$0xff]   ;;  %v547_v15 = vsel %vm545_vm2, %v546_v12, 0 }
   0x4   :  { %1860 = vmatprep.mubr.msk.bf16.mxu0 %vm447_vm0, %v2057_v5  ;;  %v2081_v8 = vld [vmem:[%s3737_s0 + $0x104] ss:$8 sps:$4 sm:$0xff]   ;;  %v2054_v14 = vld [vmem:[%s3738_s1 + $0x48] ss:$0 sps:$4 sm:$0x33]  }
   0x5   :  { %1876 = vmatprep.mubr.msk.bf16.mxu1 %vm447_vm0, %v2081_v8  ;;  %v2053_v13 = vld [vmem:[%s3738_s1 + $0x40] sm:$0xff]   ;;  %v549_v16 = vand.u32 %v2054_v14, %v547_v15  ;;  %v2058_v19 = vld [vmem:[%s3737_s0 + $0x14] ss:$8 sps:$4 sm:$0xff]   ;;  %v2060_v21 = vld [vmem:[%s3737_s0 + $0x10] ss:$8 sps:$4 sm:$0xff]  }
   0x6   :  { %554 = vmatpush1.bf16.msra.mxu0 %v2046_v2  ;;  %2031 = vmatpush1.bf16.msra.mxu1 %v2046_v2  ;;  %v2055_v17 = vld [vmem:[%s3737_s0] ss:$8 sps:$4 sm:$0xff]   ;;  %v2085_v20 = vld [vmem:[%s3737_s0 + $0x114] ss:$8 sps:$4 sm:$0xff]   ;;  %v2087_v22 = vld [vmem:[%s3737_s0 + $0x110] ss:$8 sps:$4 sm:$0xff]  }
   0x7   :  { %555 = vmatprep.subr.bf16.mxu0 %v2177_v1  ;;  %2022 = vmatprep.subr.bf16.mxu1 %v2177_v1  ;;  %v2079_v18 = vld [vmem:[%s3737_s0 + $0x100] ss:$8 sps:$4 sm:$0xff]   ;;  %v2061_v23 = vld [vmem:[%s3737_s0 + $0x24] ss:$8 sps:$4 sm:$0xff]  }
   0x8   :  { %v2091_v24 = vld [vmem:[%s3737_s0 + $0x124] ss:$8 sps:$4 sm:$0xff]  }
   0xa   :  { %556 = vmatpush1.bf16.msra.mxu0 %v2047_v3  ;;  %2032 = vmatpush1.bf16.msra.mxu1 %v2047_v3 }
   0xb   :  { %557 = vmatprep.subr.bf16.mxu0 %v2177_v1  ;;  %2023 = vmatprep.subr.bf16.mxu1 %v2177_v1 }
   0xe   :  { %558 = vmatpush1.bf16.msra.mxu0 %v2048_v4  ;;  %2033 = vmatpush1.bf16.msra.mxu1 %v2048_v4 }
   0xf   :  { %559 = vmatprep.subr.bf16.mxu0 %v2177_v1  ;;  %2024 = vmatprep.subr.bf16.mxu1 %v2177_v1 }
  0x12   :  { %560 = vmatpush1.bf16.msra.mxu0 %v2049_v6  ;;  %2034 = vmatpush1.bf16.msra.mxu1 %v2049_v6 }
  0x13   :  { %561 = vmatprep.subr.bf16.mxu0 %v2177_v1  ;;  %2025 = vmatprep.subr.bf16.mxu1 %v2177_v1 }
  0x16   :  { %562 = vmatpush1.bf16.msra.mxu0 %v2050_v7  ;;  %2035 = vmatpush1.bf16.msra.mxu1 %v2050_v7 }
  0x17   :  { %563 = vmatprep.subr.bf16.mxu0 %v2177_v1  ;;  %2026 = vmatprep.subr.bf16.mxu1 %v2177_v1 }
  0x1a   :  { %564 = vmatpush1.bf16.msra.mxu0 %v2051_v9  ;;  %2036 = vmatpush1.bf16.msra.mxu1 %v2051_v9 }
  0x1b   :  { %565 = vmatprep.subr.bf16.mxu0 %v2177_v1  ;;  %2027 = vmatprep.subr.bf16.mxu1 %v2177_v1 }
  0x1e   :  { %566 = vmatpush1.bf16.msra.mxu0 %v2052_v10  ;;  %2037 = vmatpush1.bf16.msra.mxu1 %v2052_v10 }
  0x1f   :  { %567 = vmatprep.subr.bf16.mxu0 %v2177_v1  ;;  %2028 = vmatprep.subr.bf16.mxu1 %v2177_v1 }
  0x22   :  { %568 = vmatpush1.bf16.msra.mxu0 %v2053_v13  ;;  %2038 = vmatpush1.bf16.msra.mxu1 %v2053_v13 }
  0x23   :  { %569 = vmatprep.subr.bf16.mxu0 %v2177_v1  ;;  %2029 = vmatprep.subr.bf16.mxu1 %v2177_v1 }
  0x26   :  { %570 = vmatpush1.bf16.msra.mxu0 %v549_v16  ;;  %2039 = vmatpush1.bf16.msra.mxu1 %v549_v16 }
  0x29   :  { %584 = vmatmul.mubr.bf16.vlgmr.msra.gmra.mrb[0].mxu0 %v2055_v17  ;;  %712 = vmatmul.mubr.bf16.vlgmr.msra.gmra.mrb[0].mxu1 %v2079_v18 }
  0x2a   :  { %1861 = vmatprep.mubr.msk.bf16.mxu0 %vm447_vm0, %v2058_v19  ;;  %1877 = vmatprep.mubr.msk.bf16.mxu1 %vm447_vm0, %v2085_v20 }
  0x31   :  { %592 = vmatmul.mubr.bf16.gmra.mrb[4].mxu0 %v2060_v21  ;;  %720 = vmatmul.mubr.bf16.gmra.mrb[4].mxu1 %v2087_v22 }
  0x32   :  { %1862 = vmatprep.mubr.msk.bf16.mxu0 %vm447_vm0, %v2061_v23  ;;  %1878 = vmatprep.mubr.msk.bf16.mxu1 %vm447_vm0, %v2091_v24 }
  0x33   :  { %9 = vsyncpa [#allocation3], 0  ;;  %v2063_v25 = vld [vmem:[%s3737_s0 + $0x20] ss:$8 sps:$4 sm:$0xff]   ;;  %v2064_v27 = vld [vmem:[%s3737_s0 + $0x34] ss:$8 sps:$4 sm:$0xff]  }
  0x34   :  { %v2093_v26 = vld [vmem:[%s3737_s0 + $0x120] ss:$8 sps:$4 sm:$0xff]   ;;  %v2097_v28 = vld [vmem:[%s3737_s0 + $0x134] ss:$8 sps:$4 sm:$0xff]   ;;  %v2066_v29 = vld [vmem:[%s3737_s0 + $0x30] ss:$8 sps:$4 sm:$0xff]  }
  0x35   :  { %v2099_v30 = vld [vmem:[%s3737_s0 + $0x130] ss:$8 sps:$4 sm:$0xff]   ;;  %v2067_v31 = vld [vmem:[%s3737_s0 + $0x44] ss:$8 sps:$4 sm:$0xff]   ;;  %v2069_v33 = vld [vmem:[%s3737_s0 + $0x40] ss:$8 sps:$4 sm:$0xff]  }
  0x36   :  { %v2103_v32 = vld [vmem:[%s3737_s0 + $0x144] ss:$8 sps:$4 sm:$0xff]   ;;  %v2105_v34 = vld [vmem:[%s3737_s0 + $0x140] ss:$8 sps:$4 sm:$0xff]   ;;  %v2070_v35 = vld [vmem:[%s3737_s0 + $0x54] ss:$8 sps:$4 sm:$0xff]  }
  0x37   :  { %v2109_v36 = vld [vmem:[%s3737_s0 + $0x154] ss:$8 sps:$4 sm:$0xff]   ;;  %v2072_v37 = vld [vmem:[%s3737_s0 + $0x50] ss:$8 sps:$4 sm:$0xff]   ;;  %v2073_v39 = vld [vmem:[%s3737_s0 + $0x64] ss:$8 sps:$4 sm:$0xff]  }
  0x38   :  { %v2111_v38 = vld [vmem:[%s3737_s0 + $0x150] ss:$8 sps:$4 sm:$0xff]   ;;  %v2115_v40 = vld [vmem:[%s3737_s0 + $0x164] ss:$8 sps:$4 sm:$0xff]   ;;  %v2075_v41 = vld [vmem:[%s3737_s0 + $0x60] ss:$8 sps:$4 sm:$0xff]  }
  0x39   :  { %600 = vmatmul.mubr.bf16.gmra.mrb[8].mxu0 %v2063_v25  ;;  %728 = vmatmul.mubr.bf16.gmra.mrb[8].mxu1 %v2093_v26  ;;  %v2117_v42 = vld [vmem:[%s3737_s0 + $0x160] ss:$8 sps:$4 sm:$0xff]   ;;  %v2076_v43 = vld [vmem:[%s3737_s0 + $0x74] ss:$8 sps:$4 sm:$0xff]   ;;  %v2078_v45 = vld [vmem:[%s3737_s0 + $0x70] ss:$8 sps:$4 sm:$0xff]  }
  0x3a   :  { %1863 = vmatprep.mubr.msk.bf16.mxu0 %vm447_vm0, %v2064_v27  ;;  %1879 = vmatprep.mubr.msk.bf16.mxu1 %vm447_vm0, %v2097_v28  ;;  %v2121_v44 = vld [vmem:[%s3737_s0 + $0x174] ss:$8 sps:$4 sm:$0xff]   ;;  %v2123_v46 = vld [vmem:[%s3737_s0 + $0x170] ss:$8 sps:$4 sm:$0xff]   ;;  %v2082_v47 = vld [vmem:[%s3737_s0 + $0x84] ss:$8 sps:$4 sm:$0xff]  }
  0x3b   :  { %v2127_v48 = vld [vmem:[%s3737_s0 + $0x184] ss:$8 sps:$4 sm:$0xff]   ;;  %v2084_v49 = vld [vmem:[%s3737_s0 + $0x80] ss:$8 sps:$4 sm:$0xff]   ;;  %v2088_v51 = vld [vmem:[%s3737_s0 + $0x94] ss:$8 sps:$4 sm:$0xff]  }
  0x3c   :  { %v2129_v50 = vld [vmem:[%s3737_s0 + $0x180] ss:$8 sps:$4 sm:$0xff]   ;;  %v2130_v52 = vld [vmem:[%s3737_s0 + $0x194] ss:$8 sps:$4 sm:$0xff]   ;;  %v2090_v53 = vld [vmem:[%s3737_s0 + $0x90] ss:$8 sps:$4 sm:$0xff]  }
  0x3d   :  { %v2132_v54 = vld [vmem:[%s3737_s0 + $0x190] ss:$8 sps:$4 sm:$0xff]   ;;  %v2094_v55 = vld [vmem:[%s3737_s0 + $0xa4] ss:$8 sps:$4 sm:$0xff]   ;;  %v2096_v57 = vld [vmem:[%s3737_s0 + $0xa0] ss:$8 sps:$4 sm:$0xff]  }
  0x3e   :  { %v2133_v56 = vld [vmem:[%s3737_s0 + $0x1a4] ss:$8 sps:$4 sm:$0xff]   ;;  %v2135_v58 = vld [vmem:[%s3737_s0 + $0x1a0] ss:$8 sps:$4 sm:$0xff]   ;;  %v2100_v59 = vld [vmem:[%s3737_s0 + $0xb4] ss:$8 sps:$4 sm:$0xff]  }
  0x3f   :  { %v2136_v60 = vld [vmem:[%s3737_s0 + $0x1b4] ss:$8 sps:$4 sm:$0xff]   ;;  %v2102_v61 = vld [vmem:[%s3737_s0 + $0xb0] ss:$8 sps:$4 sm:$0xff]   ;;  %v2106_v63 = vld [vmem:[%s3737_s0 + $0xc4] ss:$8 sps:$4 sm:$0xff]  }
  0x40   :  { %v2138_v62 = vld [vmem:[%s3737_s0 + $0x1b0] ss:$8 sps:$4 sm:$0xff]   ;;  %v2139_v0 = vld [vmem:[%s3737_s0 + $0x1c4] ss:$8 sps:$4 sm:$0xff]   ;;  %v2108_v1 = vld [vmem:[%s3737_s0 + $0xc0] ss:$8 sps:$4 sm:$0xff]  }
  0x41   :  { %608 = vmatmul.mubr.bf16.gmra.mrb[12].mxu0 %v2066_v29  ;;  %736 = vmatmul.mubr.bf16.gmra.mrb[12].mxu1 %v2099_v30  ;;  %v2141_v2 = vld [vmem:[%s3737_s0 + $0x1c0] ss:$8 sps:$4 sm:$0xff]   ;;  %v2112_v3 = vld [vmem:[%s3737_s0 + $0xd4] ss:$8 sps:$4 sm:$0xff]   ;;  %v2114_v5 = vld [vmem:[%s3737_s0 + $0xd0] ss:$8 sps:$4 sm:$0xff]  }
  0x42   :  { %1864 = vmatprep.mubr.msk.bf16.mxu0 %vm447_vm0, %v2067_v31  ;;  %1880 = vmatprep.mubr.msk.bf16.mxu1 %vm447_vm0, %v2103_v32  ;;  %v2142_v4 = vld [vmem:[%s3737_s0 + $0x1d4] ss:$8 sps:$4 sm:$0xff]   ;;  %v2144_v6 = vld [vmem:[%s3737_s0 + $0x1d0] ss:$8 sps:$4 sm:$0xff]   ;;  %v2118_v7 = vld [vmem:[%s3737_s0 + $0xe4] ss:$8 sps:$4 sm:$0xff]  }
  0x43   :  { %v2145_v8 = vld [vmem:[%s3737_s0 + $0x1e4] ss:$8 sps:$4 sm:$0xff]   ;;  %v2120_v9 = vld [vmem:[%s3737_s0 + $0xe0] ss:$8 sps:$4 sm:$0xff]   ;;  %v2124_v11 = vld [vmem:[%s3737_s0 + $0xf4] ss:$8 sps:$4 sm:$0xff]  }
  0x44   :  { %v2147_v10 = vld [vmem:[%s3737_s0 + $0x1e0] ss:$8 sps:$4 sm:$0xff]   ;;  %v2148_v12 = vld [vmem:[%s3737_s0 + $0x1f4] ss:$8 sps:$4 sm:$0xff]   ;;  %v2126_v13 = vld [vmem:[%s3737_s0 + $0xf0] ss:$8 sps:$4 sm:$0xff]  }
  0x45   :  { %v2150_v14 = vld [vmem:[%s3737_s0 + $0x1f0] ss:$8 sps:$4 sm:$0xff]   ;;  %vm840_vm3 = vcmask 523264   ;;  %vm1705_vm4 = vcmask 519168  }
  0x49   :  { %616 = vmatmul.mubr.bf16.gmra.mrb[16].mxu0 %v2069_v33  ;;  %744 = vmatmul.mubr.bf16.gmra.mrb[16].mxu1 %v2105_v34 }
  0x4a   :  { %1865 = vmatprep.mubr.msk.bf16.mxu0 %vm447_vm0, %v2070_v35  ;;  %1881 = vmatprep.mubr.msk.bf16.mxu1 %vm447_vm0, %v2109_v36 }
  0x51   :  { %624 = vmatmul.mubr.bf16.gmra.mrb[20].mxu0 %v2072_v37  ;;  %752 = vmatmul.mubr.bf16.gmra.mrb[20].mxu1 %v2111_v38 }
  0x52   :  { %1866 = vmatprep.mubr.msk.bf16.mxu0 %vm447_vm0, %v2073_v39  ;;  %1882 = vmatprep.mubr.msk.bf16.mxu1 %vm447_vm0, %v2115_v40 }
  0x59   :  { %632 = vmatmul.mubr.bf16.gmra.mrb[24].mxu0 %v2075_v41  ;;  %760 = vmatmul.mubr.bf16.gmra.mrb[24].mxu1 %v2117_v42 }
  0x5a   :  { %1867 = vmatprep.mubr.msk.bf16.mxu0 %vm447_vm0, %v2076_v43  ;;  %1883 = vmatprep.mubr.msk.bf16.mxu1 %vm447_vm0, %v2121_v44 }
  0x61   :  { %640 = vmatmul.mubr.bf16.gmra.mrb[28].mxu0 %v2078_v45  ;;  %768 = vmatmul.mubr.bf16.gmra.mrb[28].mxu1 %v2123_v46 }
  0x62   :  { %1868 = vmatprep.mubr.msk.bf16.mxu0 %vm447_vm0, %v2082_v47  ;;  %1884 = vmatprep.mubr.msk.bf16.mxu1 %vm447_vm0, %v2127_v48 }
  0x69   :  { %648 = vmatmul.mubr.bf16.gmra.mrb[32].mxu0 %v2084_v49  ;;  %776 = vmatmul.mubr.bf16.gmra.mrb[32].mxu1 %v2129_v50 }
  0x6a   :  { %1869 = vmatprep.mubr.msk.bf16.mxu0 %vm447_vm0, %v2088_v51  ;;  %1885 = vmatprep.mubr.msk.bf16.mxu1 %vm447_vm0, %v2130_v52 }
  0x71   :  { %656 = vmatmul.mubr.bf16.gmra.mrb[36].mxu0 %v2090_v53  ;;  %784 = vmatmul.mubr.bf16.gmra.mrb[36].mxu1 %v2132_v54 }
  0x72   :  { %1870 = vmatprep.mubr.msk.bf16.mxu0 %vm447_vm0, %v2094_v55  ;;  %1886 = vmatprep.mubr.msk.bf16.mxu1 %vm447_vm0, %v2133_v56 }
  0x79   :  { %664 = vmatmul.mubr.bf16.gmra.mrb[40].mxu0 %v2096_v57  ;;  %792 = vmatmul.mubr.bf16.gmra.mrb[40].mxu1 %v2135_v58 }
  0x7a   :  { %1871 = vmatprep.mubr.msk.bf16.mxu0 %vm447_vm0, %v2100_v59  ;;  %1887 = vmatprep.mubr.msk.bf16.mxu1 %vm447_vm0, %v2136_v60 }
  0x81   :  { %672 = vmatmul.mubr.bf16.gmra.mrb[44].mxu0 %v2102_v61  ;;  %800 = vmatmul.mubr.bf16.gmra.mrb[44].mxu1 %v2138_v62 }
  0x82   :  { %1872 = vmatprep.mubr.msk.bf16.mxu0 %vm447_vm0, %v2106_v63  ;;  %1888 = vmatprep.mubr.msk.bf16.mxu1 %vm447_vm0, %v2139_v0 }
  0x89   :  { %680 = vmatmul.mubr.bf16.gmra.mrb[48].mxu0 %v2108_v1  ;;  %808 = vmatmul.mubr.bf16.gmra.mrb[48].mxu1 %v2141_v2 }
  0x8a   :  { %1873 = vmatprep.mubr.msk.bf16.mxu0 %vm447_vm0, %v2112_v3  ;;  %1889 = vmatprep.mubr.msk.bf16.mxu1 %vm447_vm0, %v2142_v4 }
  0x91   :  { %688 = vmatmul.mubr.bf16.gmra.mrb[52].mxu0 %v2114_v5  ;;  %816 = vmatmul.mubr.bf16.gmra.mrb[52].mxu1 %v2144_v6 }
  0x92   :  { %1874 = vmatprep.mubr.msk.bf16.mxu0 %vm447_vm0, %v2118_v7  ;;  %1890 = vmatprep.mubr.msk.bf16.mxu1 %vm447_vm0, %v2145_v8 }
  0x99   :  { %696 = vmatmul.mubr.bf16.gmra.mrb[56].mxu0 %v2120_v9  ;;  %824 = vmatmul.mubr.bf16.gmra.mrb[56].mxu1 %v2147_v10 }
  0x9a   :  { %1875 = vmatprep.mubr.msk.bf16.mxu0 %vm447_vm0, %v2124_v11  ;;  %1891 = vmatprep.mubr.msk.bf16.mxu1 %vm447_vm0, %v2148_v12 }
  0xa1   :  { %704 = vmatmul.mubr.bf16.gmra.mrb[60].mxu0 %v2126_v13  ;;  %832 = vmatmul.mubr.bf16.gmra.mrb[60].mxu1 %v2150_v14 }
  0xfc   :  { %v2461_v15 = vpop.f32.mrb[0].mxu0  ;;  %v2463_v16 = vpop.f32.mrb[0].mxu1 }
  0xfd   :  { %v587_v17 = vpop.f32.mrb[1].mxu0  ;;  %v715_v18 = vpop.f32.mrb[1].mxu1  ;;  %v841_v21 = vsel %vm840_vm3, %v2461_v15, 0.0 }
  0xfe   :  { %v2465_v19 = vpop.f32.mrb[2].mxu0  ;;  %v2467_v20 = vpop.f32.mrb[2].mxu1 }
  0xff   :  { %v842_v22 = vsel %vm840_vm3, %v2465_v19, 0.0  ;;  %v590_v23 = vpop.f32.mrb[3].mxu0  ;;  %v718_v24 = vpop.f32.mrb[3].mxu1 }
 0x100   :  { %v843_v25 = vadd.f32 %v842_v22, %v841_v21 }
 0x104   :  { %v2473_v26 = vpop.f32.mrb[4].mxu0  ;;  %v2475_v27 = vpop.f32.mrb[4].mxu1 }
 0x105   :  { %v844_v28 = vsel %vm840_vm3, %v2473_v26, 0.0  ;;  %v595_v29 = vpop.f32.mrb[5].mxu0  ;;  %v723_v30 = vpop.f32.mrb[5].mxu1 }
 0x106   :  { %v845_v31 = vadd.f32 %v844_v28, %v843_v25  ;;  %v2479_v32 = vpop.f32.mrb[6].mxu0  ;;  %v2481_v33 = vpop.f32.mrb[6].mxu1 }
 0x107   :  { %3805 = vst [vmem:[#allocation5_spill] sm:$0xff] %v2479_v32  ;;  %v846_v34 = vsel %vm840_vm3, %v2479_v32, 0.0  ;;  %v598_v35 = vpop.f32.mrb[7].mxu0  ;;  %v726_v36 = vpop.f32.mrb[7].mxu1 }
 0x108   :  { %v847_v37 = vadd.f32 %v846_v34, %v845_v31 }
 0x10c   :  { %v2485_v38 = vpop.f32.mrb[8].mxu0  ;;  %v2487_v39 = vpop.f32.mrb[8].mxu1 }
 0x10d   :  { %3806 = vst [vmem:[#allocation6_spill] sm:$0xff] %v2485_v38  ;;  %v848_v40 = vsel %vm840_vm3, %v2485_v38, 0.0  ;;  %v603_v41 = vpop.f32.mrb[9].mxu0  ;;  %v731_v42 = vpop.f32.mrb[9].mxu1 }
 0x10e   :  { %v849_v43 = vadd.f32 %v848_v40, %v847_v37  ;;  %v2491_v44 = vpop.f32.mrb[10].mxu0  ;;  %v2493_v45 = vpop.f32.mrb[10].mxu1 }
 0x10f   :  { %3807 = vst [vmem:[#allocation7_spill] sm:$0xff] %v2491_v44  ;;  %v850_v46 = vsel %vm840_vm3, %v2491_v44, 0.0  ;;  %v606_v47 = vpop.f32.mrb[11].mxu0  ;;  %v734_v48 = vpop.f32.mrb[11].mxu1 }
 0x110   :  { %v851_v49 = vadd.f32 %v850_v46, %v849_v43 }
 0x114   :  { %v2497_v50 = vpop.f32.mrb[12].mxu0  ;;  %v2499_v51 = vpop.f32.mrb[12].mxu1 }
 0x115   :  { %v852_v52 = vsel %vm840_vm3, %v2497_v50, 0.0  ;;  %v611_v53 = vpop.f32.mrb[13].mxu0  ;;  %v739_v54 = vpop.f32.mrb[13].mxu1 }
 0x116   :  { %v853_v55 = vadd.f32 %v852_v52, %v851_v49  ;;  %v2503_v56 = vpop.f32.mrb[14].mxu0  ;;  %v2505_v57 = vpop.f32.mrb[14].mxu1 }
 0x117   :  { %v854_v58 = vsel %vm840_vm3, %v2503_v56, 0.0  ;;  %v614_v59 = vpop.f32.mrb[15].mxu0  ;;  %v742_v60 = vpop.f32.mrb[15].mxu1 }
 0x118   :  { %v855_v61 = vadd.f32 %v854_v58, %v853_v55 }
 0x11c   :  { %v2509_v62 = vpop.f32.mrb[16].mxu0  ;;  %v2511_v63 = vpop.f32.mrb[16].mxu1 }
 0x11d   :  { %v856_v0 = vsel %vm840_vm3, %v2509_v62, 0.0  ;;  %v619_v1 = vpop.f32.mrb[17].mxu0  ;;  %v747_v2 = vpop.f32.mrb[17].mxu1 }
 0x11e   :  { %v857_v3 = vadd.f32 %v856_v0, %v855_v61  ;;  %v2515_v4 = vpop.f32.mrb[18].mxu0  ;;  %v2517_v5 = vpop.f32.mrb[18].mxu1 }
 0x11f   :  { %v858_v6 = vsel %vm840_vm3, %v2515_v4, 0.0  ;;  %v622_v7 = vpop.f32.mrb[19].mxu0  ;;  %v750_v8 = vpop.f32.mrb[19].mxu1 }
 0x120   :  { %v859_v9 = vadd.f32 %v858_v6, %v857_v3 }
 0x124   :  { %v2521_v10 = vpop.f32.mrb[20].mxu0  ;;  %v2523_v11 = vpop.f32.mrb[20].mxu1 }
 0x125   :  { %v860_v12 = vsel %vm840_vm3, %v2521_v10, 0.0  ;;  %v627_v13 = vpop.f32.mrb[21].mxu0  ;;  %v755_v14 = vpop.f32.mrb[21].mxu1 }
 0x126   :  { %v861_v17 = vadd.f32 %v860_v12, %v859_v9  ;;  %v2527_v18 = vpop.f32.mrb[22].mxu0  ;;  %v2529_v21 = vpop.f32.mrb[22].mxu1 }
 0x127   :  { %v862_v22 = vsel %vm840_vm3, %v2527_v18, 0.0  ;;  %v630_v23 = vpop.f32.mrb[23].mxu0  ;;  %v758_v24 = vpop.f32.mrb[23].mxu1 }
 0x128   :  { %v863_v25 = vadd.f32 %v862_v22, %v861_v17 }
 0x12c   :  { %v2533_v28 = vpop.f32.mrb[24].mxu0  ;;  %v2535_v29 = vpop.f32.mrb[24].mxu1 }
 0x12d   :  { %v864_v30 = vsel %vm840_vm3, %v2533_v28, 0.0  ;;  %v635_v31 = vpop.f32.mrb[25].mxu0  ;;  %v763_v34 = vpop.f32.mrb[25].mxu1 }
 0x12e   :  { %v865_v35 = vadd.f32 %v864_v30, %v863_v25  ;;  %v2539_v36 = vpop.f32.mrb[26].mxu0  ;;  %v2541_v37 = vpop.f32.mrb[26].mxu1 }
 0x12f   :  { %v866_v40 = vsel %vm840_vm3, %v2539_v36, 0.0  ;;  %v638_v41 = vpop.f32.mrb[27].mxu0  ;;  %v766_v42 = vpop.f32.mrb[27].mxu1 }
 0x130   :  { %v867_v43 = vadd.f32 %v866_v40, %v865_v35 }
 0x134   :  { %v2545_v46 = vpop.f32.mrb[28].mxu0  ;;  %v2547_v47 = vpop.f32.mrb[28].mxu1 }
 0x135   :  { %v868_v48 = vsel %vm840_vm3, %v2545_v46, 0.0  ;;  %v643_v49 = vpop.f32.mrb[29].mxu0  ;;  %v771_v52 = vpop.f32.mrb[29].mxu1 }
 0x136   :  { %v869_v53 = vadd.f32 %v868_v48, %v867_v43  ;;  %v2551_v54 = vpop.f32.mrb[30].mxu0  ;;  %v2553_v55 = vpop.f32.mrb[30].mxu1 }
 0x137   :  { %3808 = vst [vmem:[#allocation8_spill] sm:$0xff] %v2551_v54  ;;  %v870_v58 = vsel %vm840_vm3, %v2551_v54, 0.0  ;;  %v646_v59 = vpop.f32.mrb[31].mxu0  ;;  %v774_v60 = vpop.f32.mrb[31].mxu1 }
 0x138   :  { %v871_v61 = vadd.f32 %v870_v58, %v869_v53 }
 0x13c   :  { %v2557_v0 = vpop.f32.mrb[32].mxu0  ;;  %v2559_v1 = vpop.f32.mrb[32].mxu1 }
 0x13d   :  { %3809 = vst [vmem:[#allocation9_spill] sm:$0xff] %v2557_v0  ;;  %v872_v2 = vsel %vm840_vm3, %v2557_v0, 0.0  ;;  %v651_v3 = vpop.f32.mrb[33].mxu0  ;;  %v779_v6 = vpop.f32.mrb[33].mxu1 }
 0x13e   :  { %v873_v7 = vadd.f32 %v872_v2, %v871_v61  ;;  %v2563_v8 = vpop.f32.mrb[34].mxu0  ;;  %v2565_v9 = vpop.f32.mrb[34].mxu1 }
 0x13f   :  { %3810 = vst [vmem:[#allocation10_spill] sm:$0xff] %v2563_v8  ;;  %v874_v12 = vsel %vm840_vm3, %v2563_v8, 0.0  ;;  %v654_v13 = vpop.f32.mrb[35].mxu0  ;;  %v782_v14 = vpop.f32.mrb[35].mxu1 }
 0x140   :  { %v875_v17 = vadd.f32 %v874_v12, %v873_v7 }
 0x144   :  { %v2569_v22 = vpop.f32.mrb[36].mxu0  ;;  %v2571_v23 = vpop.f32.mrb[36].mxu1 }
 0x145   :  { %3811 = vst [vmem:[#allocation11_spill] sm:$0xff] %v2569_v22  ;;  %v876_v24 = vsel %vm840_vm3, %v2569_v22, 0.0  ;;  %v659_v25 = vpop.f32.mrb[37].mxu0  ;;  %v787_v30 = vpop.f32.mrb[37].mxu1 }
 0x146   :  { %v877_v31 = vadd.f32 %v876_v24, %v875_v17  ;;  %v2575_v34 = vpop.f32.mrb[38].mxu0  ;;  %v2577_v35 = vpop.f32.mrb[38].mxu1 }
 0x147   :  { %3812 = vst [vmem:[#allocation12_spill] sm:$0xff] %v2575_v34  ;;  %v878_v40 = vsel %vm840_vm3, %v2575_v34, 0.0  ;;  %v662_v41 = vpop.f32.mrb[39].mxu0  ;;  %v790_v42 = vpop.f32.mrb[39].mxu1 }
 0x148   :  { %v879_v43 = vadd.f32 %v878_v40, %v877_v31 }
 0x14c   :  { %v2581_v48 = vpop.f32.mrb[40].mxu0  ;;  %v2583_v49 = vpop.f32.mrb[40].mxu1 }
 0x14d   :  { %3813 = vst [vmem:[#allocation13_spill] sm:$0xff] %v2581_v48  ;;  %v880_v52 = vsel %vm840_vm3, %v2581_v48, 0.0  ;;  %v667_v53 = vpop.f32.mrb[41].mxu0  ;;  %v795_v58 = vpop.f32.mrb[41].mxu1 }
 0x14e   :  { %v881_v59 = vadd.f32 %v880_v52, %v879_v43  ;;  %v2587_v60 = vpop.f32.mrb[42].mxu0  ;;  %v2589_v61 = vpop.f32.mrb[42].mxu1 }
 0x14f   :  { %3814 = vst [vmem:[#allocation14_spill] sm:$0xff] %v2587_v60  ;;  %v882_v2 = vsel %vm840_vm3, %v2587_v60, 0.0  ;;  %v670_v3 = vpop.f32.mrb[43].mxu0  ;;  %v798_v6 = vpop.f32.mrb[43].mxu1 }
 0x150   :  { %v883_v7 = vadd.f32 %v882_v2, %v881_v59 }
 0x154   :  { %v2593_v12 = vpop.f32.mrb[44].mxu0  ;;  %v2595_v13 = vpop.f32.mrb[44].mxu1 }
 0x155   :  { %3815 = vst [vmem:[#allocation15_spill] sm:$0xff] %v2593_v12  ;;  %v884_v14 = vsel %vm840_vm3, %v2593_v12, 0.0  ;;  %v675_v17 = vpop.f32.mrb[45].mxu0  ;;  %v803_v24 = vpop.f32.mrb[45].mxu1 }
 0x156   :  { %v885_v25 = vadd.f32 %v884_v14, %v883_v7  ;;  %v2599_v30 = vpop.f32.mrb[46].mxu0  ;;  %v2601_v31 = vpop.f32.mrb[46].mxu1 }
 0x157   :  { %3816 = vst [vmem:[#allocation16_spill] sm:$0xff] %v2599_v30  ;;  %3817 = vst [vmem:[#allocation17_spill] sm:$0xff] %v2601_v31  ;;  %v886_v40 = vsel %vm840_vm3, %v2599_v30, 0.0  ;;  %v678_v41 = vpop.f32.mrb[47].mxu0  ;;  %v806_v42 = vpop.f32.mrb[47].mxu1 }
 0x158   :  { %v887_v43 = vadd.f32 %v886_v40, %v885_v25 }
 0x15c   :  { %v2605_v52 = vpop.f32.mrb[48].mxu0  ;;  %v2607_v53 = vpop.f32.mrb[48].mxu1 }
 0x15d   :  { %3818 = vst [vmem:[#allocation18_spill] sm:$0xff] %v2605_v52  ;;  %3819 = vst [vmem:[#allocation19_spill] sm:$0xff] %v2607_v53  ;;  %v888_v58 = vsel %vm840_vm3, %v2605_v52, 0.0  ;;  %v683_v59 = vpop.f32.mrb[49].mxu0  ;;  %v811_v2 = vpop.f32.mrb[49].mxu1 }
 0x15e   :  { %v889_v3 = vadd.f32 %v888_v58, %v887_v43  ;;  %v2611_v6 = vpop.f32.mrb[50].mxu0  ;;  %v2613_v7 = vpop.f32.mrb[50].mxu1 }
 0x15f   :  { %3820 = vst [vmem:[#allocation20_spill] sm:$0xff] %v2611_v6  ;;  %3821 = vst [vmem:[#allocation21_spill] sm:$0xff] %v2613_v7  ;;  %v890_v14 = vsel %vm840_vm3, %v2611_v6, 0.0  ;;  %v686_v17 = vpop.f32.mrb[51].mxu0  ;;  %v814_v24 = vpop.f32.mrb[51].mxu1 }
 0x160   :  { %v891_v25 = vadd.f32 %v890_v14, %v889_v3 }
 0x164   :  { %v2617_v40 = vpop.f32.mrb[52].mxu0  ;;  %v2619_v41 = vpop.f32.mrb[52].mxu1 }
 0x165   :  { %3822 = vst [vmem:[#allocation22_spill] sm:$0xff] %v2617_v40  ;;  %3823 = vst [vmem:[#allocation23_spill] sm:$0xff] %v2619_v41  ;;  %v892_v42 = vsel %vm840_vm3, %v2617_v40, 0.0  ;;  %v691_v59 = vpop.f32.mrb[53].mxu0  ;;  %v819_v2 = vpop.f32.mrb[53].mxu1 }
 0x166   :  { %v893_v43 = vadd.f32 %v892_v42, %v891_v25  ;;  %v2623_v58 = vpop.f32.mrb[54].mxu0  ;;  %v2625_v52 = vpop.f32.mrb[54].mxu1 }
 0x167   :  { %3824 = vst [vmem:[#allocation24_spill] sm:$0xff] %v2623_v58  ;;  %3825 = vst [vmem:[#allocation25_spill] sm:$0xff] %v2625_v52  ;;  %v894_v6 = vsel %vm840_vm3, %v2623_v58, 0.0  ;;  %v694_v17 = vpop.f32.mrb[55].mxu0  ;;  %v822_v24 = vpop.f32.mrb[55].mxu1 }
 0x168   :  { %v895_v3 = vadd.f32 %v894_v6, %v893_v43 }
 0x16c   :  { %v2629_v14 = vpop.f32.mrb[56].mxu0  ;;  %v2631_v30 = vpop.f32.mrb[56].mxu1 }
 0x16d   :  { %3826 = vst [vmem:[#allocation26_spill] sm:$0xff] %v2629_v14  ;;  %3827 = vst [vmem:[#allocation27_spill] sm:$0xff] %v2631_v30  ;;  %v896_v40 = vsel %vm840_vm3, %v2629_v14, 0.0  ;;  %v699_v59 = vpop.f32.mrb[57].mxu0  ;;  %v827_v2 = vpop.f32.mrb[57].mxu1 }
 0x16e   :  { %v897_v25 = vadd.f32 %v896_v40, %v895_v3  ;;  %v2635_v42 = vpop.f32.mrb[58].mxu0  ;;  %v2637_v12 = vpop.f32.mrb[58].mxu1 }
 0x16f   :  { %3828 = vst [vmem:[#allocation28_spill] sm:$0xff] %v2635_v42  ;;  %3829 = vst [vmem:[#allocation29_spill] sm:$0xff] %v2637_v12  ;;  %v898_v58 = vsel %vm840_vm3, %v2635_v42, 0.0  ;;  %v702_v17 = vpop.f32.mrb[59].mxu0  ;;  %v830_v24 = vpop.f32.mrb[59].mxu1 }
 0x170   :  { %v899_v6 = vadd.f32 %v898_v58, %v897_v25  ;;  %v904_v25 = vsel %vm840_vm3, %v2463_v16, 0.0 }
 0x174   :  { %v2641_v43 = vpop.f32.mrb[60].mxu0  ;;  %v2643_v60 = vpop.f32.mrb[60].mxu1 }
 0x175   :  { %3830 = vst [vmem:[#allocation30_spill] sm:$0xff] %v2641_v43  ;;  %3831 = vst [vmem:[#allocation31_spill] sm:$0xff] %v2643_v60  ;;  %v900_v14 = vsel %vm840_vm3, %v2641_v43, 0.0  ;;  %v707_v59 = vpop.f32.mrb[61].mxu0  ;;  %v835_v2 = vpop.f32.mrb[61].mxu1  ;;  %v906_v43 = vsel %vm840_vm3, %v2467_v20, 0.0 }
 0x176   :  { %v901_v40 = vadd.f32 %v900_v14, %v899_v6  ;;  %v2647_v3 = vpop.f32.mrb[62].mxu0  ;;  %v2649_v48 = vpop.f32.mrb[62].mxu1  ;;  %v908_v14 = vsel %vm840_vm3, %v2475_v27, 0.0  ;;  %v910_v2 = vsel %vm840_vm3, %v2481_v33, 0.0 }
 0x177   :  { %v902_v42 = vsel %vm840_vm3, %v2647_v3, 0.0  ;;  %v710_v17 = vpop.f32.mrb[63].mxu0  ;;  %v838_v24 = vpop.f32.mrb[63].mxu1 }
 0x178   :  { %v903_v58 = vadd.f32 %v902_v42, %v901_v40  ;;  %v912_v17 = vsel %vm840_vm3, %v2487_v39, 0.0  ;;  %v914_v40 = vsel %vm840_vm3, %v2493_v45, 0.0 }
 0x17a   :  { %v905_v34 = vadd.f32 %v904_v25, %v903_v58  ;;  %v916_v58 = vsel %vm840_vm3, %v2499_v51, 0.0 }
 0x17c   :  { %v907_v59 = vadd.f32 %v906_v43, %v905_v34  ;;  %v918_v43 = vsel %vm840_vm3, %v2505_v57, 0.0 }
 0x17e   :  { %v909_v6 = vadd.f32 %v908_v14, %v907_v59  ;;  %v920_v59 = vsel %vm840_vm3, %v2511_v63, 0.0 }
 0x180   :  { %v911_v22 = vadd.f32 %v910_v2, %v909_v6  ;;  %v922_v6 = vsel %vm840_vm3, %v2517_v5, 0.0  ;;  %v924_v2 = vsel %vm840_vm3, %v2523_v11, 0.0 }
 0x182   :  { %v913_v42 = vadd.f32 %v912_v17, %v911_v22 }
 0x184   :  { %v915_v24 = vadd.f32 %v914_v40, %v913_v42  ;;  %v926_v42 = vsel %vm840_vm3, %v2529_v21, 0.0 }
 0x186   :  { %v917_v34 = vadd.f32 %v916_v58, %v915_v24  ;;  %v928_v24 = vsel %vm840_vm3, %v2535_v29, 0.0 }
 0x188   :  { %v919_v25 = vadd.f32 %v918_v43, %v917_v34  ;;  %v930_v34 = vsel %vm840_vm3, %v2541_v37, 0.0 }
 0x18a   :  { %v921_v14 = vadd.f32 %v920_v59, %v919_v25  ;;  %v932_v25 = vsel %vm840_vm3, %v2547_v47, 0.0 }
 0x18c   :  { %v923_v22 = vadd.f32 %v922_v6, %v921_v14  ;;  %v934_v14 = vsel %vm840_vm3, %v2553_v55, 0.0 }
 0x18e   :  { %v925_v17 = vadd.f32 %v924_v2, %v923_v22  ;;  %v936_v22 = vsel %vm840_vm3, %v2559_v1, 0.0 }
 0x190   :  { %v927_v40 = vadd.f32 %v926_v42, %v925_v17  ;;  %v938_v17 = vsel %vm840_vm3, %v2565_v9, 0.0 }
 0x192   :  { %v929_v58 = vadd.f32 %v928_v24, %v927_v40  ;;  %v940_v40 = vsel %vm840_vm3, %v2571_v23, 0.0 }
 0x194   :  { %v931_v43 = vadd.f32 %v930_v34, %v929_v58  ;;  %v942_v58 = vsel %vm840_vm3, %v2577_v35, 0.0 }
 0x196   :  { %v933_v59 = vadd.f32 %v932_v25, %v931_v43  ;;  %v944_v43 = vsel %vm840_vm3, %v2583_v49, 0.0 }
 0x198   :  { %v935_v6 = vadd.f32 %v934_v14, %v933_v59  ;;  %v946_v59 = vsel %vm840_vm3, %v2589_v61, 0.0 }
 0x19a   :  { %v937_v2 = vadd.f32 %v936_v22, %v935_v6  ;;  %v948_v6 = vsel %vm840_vm3, %v2595_v13, 0.0 }
 0x19c   :  { %v939_v42 = vadd.f32 %v938_v17, %v937_v2  ;;  %v950_v2 = vsel %vm840_vm3, %v2601_v31, 0.0 }
 0x19e   :  { %v941_v24 = vadd.f32 %v940_v40, %v939_v42  ;;  %v952_v42 = vsel %vm840_vm3, %v2607_v53, 0.0 }
 0x1a0   :  { %v943_v34 = vadd.f32 %v942_v58, %v941_v24  ;;  %v954_v24 = vsel %vm840_vm3, %v2613_v7, 0.0 }
 0x1a2   :  { %v945_v25 = vadd.f32 %v944_v43, %v943_v34  ;;  %v956_v34 = vsel %vm840_vm3, %v2619_v41, 0.0 }
 0x1a4   :  { %v947_v14 = vadd.f32 %v946_v59, %v945_v25  ;;  %v958_v25 = vsel %vm840_vm3, %v2625_v52, 0.0 }
 0x1a6   :  { %v949_v22 = vadd.f32 %v948_v6, %v947_v14  ;;  %v960_v14 = vsel %vm840_vm3, %v2631_v30, 0.0 }
 0x1a8   :  { %v951_v17 = vadd.f32 %v950_v2, %v949_v22  ;;  %v962_v22 = vsel %vm840_vm3, %v2637_v12, 0.0  ;;  %v964_v2 = vsel %vm840_vm3, %v2643_v60, 0.0 }
 0x1aa   :  { %v953_v40 = vadd.f32 %v952_v42, %v951_v17 }
 0x1ac   :  { %v955_v58 = vadd.f32 %v954_v24, %v953_v40  ;;  %v966_v40 = vsel %vm840_vm3, %v2649_v48, 0.0 }
 0x1ae   :  { %v957_v43 = vadd.f32 %v956_v34, %v955_v58 }
 0x1b0   :  { %v959_v59 = vadd.f32 %v958_v25, %v957_v43 }
 0x1b2   :  { %v961_v6 = vadd.f32 %v960_v14, %v959_v59 }
 0x1b4   :  { %v963_v17 = vadd.f32 %v962_v22, %v961_v6 }
 0x1b6   :  { %v965_v42 = vadd.f32 %v964_v2, %v963_v17 }
 0x1b8   :  { %v967_v24 = vadd.f32 %v966_v40, %v965_v42 }
 0x1ba   :  { %v968_v58 = vrot.slane %v967_v24, 4 }
 0x1bc   :  { %v969_v34 = vadd.f32 %v968_v58, %v967_v24 }
 0x1be   :  { %v970_v52 = vrot.slane %v969_v34, 2 }
 0x1c0   :  { %v971_v43 = vadd.f32 %v970_v52, %v969_v34 }
 0x1c2   :  { %v972_v25 = vrot.slane %v971_v43, 1 }
 0x1c4   :  { %v973_v41 = vadd.f32 %v972_v25, %v971_v43 }
 0x1c6   :  { %v2717_v30 = vmul.f32 0.001953125, %v973_v41 }
 0x1c8   :  { %v976_v59 = vsub.f32 %v2461_v15, %v2717_v30  ;;  %v977_v14 = vsub.f32 %v2465_v19, %v2717_v30  ;;  %v978_v6 = vsub.f32 %v2473_v26, %v2717_v30  ;;  %v979_v22 = vsub.f32 %v2479_v32, %v2717_v30 }
 0x1c9   :  { %v980_v52 = vsub.f32 %v2485_v38, %v2717_v30  ;;  %v981_v41 = vsub.f32 %v2491_v44, %v2717_v30  ;;  %v982_v43 = vsub.f32 %v2497_v50, %v2717_v30  ;;  %v983_v38 = vsub.f32 %v2503_v56, %v2717_v30 }
 0x1ca   :  { %v1040_v2 = vmul.f32 %v976_v59, %v976_v59  ;;  %v1041_v17 = vmul.f32 %v977_v14, %v977_v14  ;;  %v1042_v42 = vmul.f32 %v978_v6, %v978_v6  ;;  %v1043_v40 = vmul.f32 %v979_v22, %v979_v22 }
 0x1cb   :  { %v1044_v25 = vmul.f32 %v980_v52, %v980_v52  ;;  %v1045_v6 = vmul.f32 %v981_v41, %v981_v41  ;;  %v984_v22 = vsub.f32 %v2509_v62, %v2717_v30  ;;  %v985_v52 = vsub.f32 %v2515_v4, %v2717_v30 }
 0x1cc   :  { %v1104_v24 = vsel %vm840_vm3, %v1040_v2, 0.0  ;;  %v1105_v58 = vsel %vm840_vm3, %v1041_v17, 0.0  ;;  %v1107_v59 = vsel %vm840_vm3, %v1042_v42, 0.0  ;;  %v1109_v32 = vsel %vm840_vm3, %v1043_v40, 0.0 }
 0x1cd   :  { %v1106_v34 = vadd.f32 %v1105_v58, %v1104_v24  ;;  %v1046_v2 = vmul.f32 %v982_v43, %v982_v43  ;;  %v1111_v17 = vsel %vm840_vm3, %v1044_v25, 0.0  ;;  %v1047_v58 = vmul.f32 %v983_v38, %v983_v38 }
 0x1ce   :  { %v1113_v42 = vsel %vm840_vm3, %v1045_v6, 0.0  ;;  %v986_v41 = vsub.f32 %v2521_v10, %v2717_v30  ;;  %v987_v43 = vsub.f32 %v2527_v18, %v2717_v30  ;;  %v988_v38 = vsub.f32 %v2533_v28, %v2717_v30 }
 0x1cf   :  { %v1108_v14 = vadd.f32 %v1107_v59, %v1106_v34  ;;  %v1048_v59 = vmul.f32 %v984_v22, %v984_v22  ;;  %v989_v22 = vsub.f32 %v2539_v36, %v2717_v30 }
 0x1d1   :  { %v1110_v44 = vadd.f32 %v1109_v32, %v1108_v14  ;;  %v1115_v32 = vsel %vm840_vm3, %v1046_v2, 0.0  ;;  %v1049_v14 = vmul.f32 %v985_v52, %v985_v52  ;;  %v1119_v6 = vsel %vm840_vm3, %v1048_v59, 0.0 }
 0x1d2   :  { %v990_v52 = vsub.f32 %v2545_v46, %v2717_v30 }
 0x1d3   :  { %v1112_v24 = vadd.f32 %v1111_v17, %v1110_v44  ;;  %v1117_v44 = vsel %vm840_vm3, %v1047_v58, 0.0  ;;  %v1050_v17 = vmul.f32 %v986_v41, %v986_v41  ;;  %v1121_v2 = vsel %vm840_vm3, %v1049_v14, 0.0 }
 0x1d4   :  { %v991_v41 = vsub.f32 %v2551_v54, %v2717_v30 }
 0x1d5   :  { %v1114_v34 = vadd.f32 %v1113_v42, %v1112_v24  ;;  %v1051_v42 = vmul.f32 %v987_v43, %v987_v43  ;;  %v1123_v58 = vsel %vm840_vm3, %v1050_v17, 0.0  ;;  %v992_v43 = vsub.f32 %v2557_v0, %v2717_v30 }
 0x1d7   :  { %v1116_v40 = vadd.f32 %v1115_v32, %v1114_v34  ;;  %v1052_v32 = vmul.f32 %v988_v38, %v988_v38  ;;  %v1125_v59 = vsel %vm840_vm3, %v1051_v42, 0.0  ;;  %v993_v38 = vsub.f32 %v2563_v8, %v2717_v30 }
 0x1d8   :  { %v1056_v54 = vmul.f32 %v992_v43, %v992_v43 }
 0x1d9   :  { %v1118_v25 = vadd.f32 %v1117_v44, %v1116_v40  ;;  %v1053_v44 = vmul.f32 %v989_v22, %v989_v22  ;;  %v1127_v14 = vsel %vm840_vm3, %v1052_v32, 0.0  ;;  %v1057_v0 = vmul.f32 %v993_v38, %v993_v38 }
 0x1db   :  { %v1120_v24 = vadd.f32 %v1119_v6, %v1118_v25  ;;  %v1054_v6 = vmul.f32 %v990_v52, %v990_v52  ;;  %v1129_v17 = vsel %vm840_vm3, %v1053_v44, 0.0  ;;  %v1135_v44 = vsel %vm840_vm3, %v1056_v54, 0.0 }
 0x1dd   :  { %v1122_v34 = vadd.f32 %v1121_v2, %v1120_v24  ;;  %v1055_v2 = vmul.f32 %v991_v41, %v991_v41  ;;  %v1131_v42 = vsel %vm840_vm3, %v1054_v6, 0.0  ;;  %v1137_v6 = vsel %vm840_vm3, %v1057_v0, 0.0 }
 0x1df   :  { %v1124_v40 = vadd.f32 %v1123_v58, %v1122_v34  ;;  %v3832_v58 = vld [vmem:[#allocation11_spill] sm:$0xff]  ;;  %v1133_v32 = vsel %vm840_vm3, %v1055_v2, 0.0 }
 0x1e0   :  { %v994_v22 = vsub.f32 %v3832_v58, %v2717_v30 }
 0x1e1   :  { %v1126_v25 = vadd.f32 %v1125_v59, %v1124_v40  ;;  %v3833_v59 = vld [vmem:[#allocation12_spill] sm:$0xff] }
 0x1e2   :  { %v995_v52 = vsub.f32 %v3833_v59, %v2717_v30  ;;  %v1058_v8 = vmul.f32 %v994_v22, %v994_v22 }
 0x1e3   :  { %v1128_v24 = vadd.f32 %v1127_v14, %v1126_v25  ;;  %v3834_v14 = vld [vmem:[#allocation13_spill] sm:$0xff] }
 0x1e4   :  { %v996_v41 = vsub.f32 %v3834_v14, %v2717_v30  ;;  %v1059_v58 = vmul.f32 %v995_v52, %v995_v52  ;;  %v1139_v2 = vsel %vm840_vm3, %v1058_v8, 0.0 }
 0x1e5   :  { %v1130_v34 = vadd.f32 %v1129_v17, %v1128_v24  ;;  %v3835_v17 = vld [vmem:[#allocation14_spill] sm:$0xff] }
 0x1e6   :  { %v997_v43 = vsub.f32 %v3835_v17, %v2717_v30  ;;  %v1060_v59 = vmul.f32 %v996_v41, %v996_v41  ;;  %v1141_v54 = vsel %vm840_vm3, %v1059_v58, 0.0 }
 0x1e7   :  { %v1132_v40 = vadd.f32 %v1131_v42, %v1130_v34  ;;  %v3836_v42 = vld [vmem:[#allocation15_spill] sm:$0xff] }
 0x1e8   :  { %v998_v38 = vsub.f32 %v3836_v42, %v2717_v30  ;;  %v1061_v14 = vmul.f32 %v997_v43, %v997_v43  ;;  %v1143_v0 = vsel %vm840_vm3, %v1060_v59, 0.0 }
 0x1e9   :  { %v1134_v25 = vadd.f32 %v1133_v32, %v1132_v40  ;;  %v3837_v32 = vld [vmem:[#allocation16_spill] sm:$0xff] }
 0x1ea   :  { %v999_v22 = vsub.f32 %v3837_v32, %v2717_v30  ;;  %v1062_v17 = vmul.f32 %v998_v38, %v998_v38  ;;  %v1145_v8 = vsel %vm840_vm3, %v1061_v14, 0.0 }
 0x1eb   :  { %v1136_v24 = vadd.f32 %v1135_v44, %v1134_v25  ;;  %v3838_v44 = vld [vmem:[#allocation18_spill] sm:$0xff] }
 0x1ec   :  { %v1000_v52 = vsub.f32 %v3838_v44, %v2717_v30  ;;  %v1063_v42 = vmul.f32 %v999_v22, %v999_v22  ;;  %v1147_v58 = vsel %vm840_vm3, %v1062_v17, 0.0 }
 0x1ed   :  { %v1138_v34 = vadd.f32 %v1137_v6, %v1136_v24  ;;  %v3839_v6 = vld [vmem:[#allocation20_spill] sm:$0xff] }
 0x1ee   :  { %v1001_v41 = vsub.f32 %v3839_v6, %v2717_v30  ;;  %v1064_v32 = vmul.f32 %v1000_v52, %v1000_v52  ;;  %v1149_v59 = vsel %vm840_vm3, %v1063_v42, 0.0 }
 0x1ef   :  { %v1140_v40 = vadd.f32 %v1139_v2, %v1138_v34  ;;  %v3840_v2 = vld [vmem:[#allocation22_spill] sm:$0xff] }
 0x1f0   :  { %v1002_v43 = vsub.f32 %v3840_v2, %v2717_v30  ;;  %v1065_v44 = vmul.f32 %v1001_v41, %v1001_v41  ;;  %v1151_v14 = vsel %vm840_vm3, %v1064_v32, 0.0 }
 0x1f1   :  { %v1142_v25 = vadd.f32 %v1141_v54, %v1140_v40  ;;  %v3841_v54 = vld [vmem:[#allocation24_spill] sm:$0xff] }
 0x1f2   :  { %v1003_v38 = vsub.f32 %v3841_v54, %v2717_v30  ;;  %v1066_v6 = vmul.f32 %v1002_v43, %v1002_v43  ;;  %v1153_v17 = vsel %vm840_vm3, %v1065_v44, 0.0  ;;  %v1007_v43 = vsub.f32 %v2647_v3, %v2717_v30 }
 0x1f3   :  { %v1144_v24 = vadd.f32 %v1143_v0, %v1142_v25  ;;  %v3842_v0 = vld [vmem:[#allocation26_spill] sm:$0xff] }
 0x1f4   :  { %v1004_v22 = vsub.f32 %v3842_v0, %v2717_v30  ;;  %v1067_v2 = vmul.f32 %v1003_v38, %v1003_v38  ;;  %v1155_v42 = vsel %vm840_vm3, %v1066_v6, 0.0  ;;  %v1008_v38 = vsub.f32 %v2463_v16, %v2717_v30 }
 0x1f5   :  { %v1146_v34 = vadd.f32 %v1145_v8, %v1144_v24  ;;  %v3843_v8 = vld [vmem:[#allocation28_spill] sm:$0xff] }
 0x1f6   :  { %v1005_v52 = vsub.f32 %v3843_v8, %v2717_v30  ;;  %v1068_v54 = vmul.f32 %v1004_v22, %v1004_v22  ;;  %v1157_v32 = vsel %vm840_vm3, %v1067_v2, 0.0  ;;  %v1009_v22 = vsub.f32 %v2467_v20, %v2717_v30 }
 0x1f7   :  { %v1148_v40 = vadd.f32 %v1147_v58, %v1146_v34  ;;  %v3844_v58 = vld [vmem:[#allocation30_spill] sm:$0xff] }
 0x1f8   :  { %v1006_v41 = vsub.f32 %v3844_v58, %v2717_v30  ;;  %v1159_v44 = vsel %vm840_vm3, %v1068_v54, 0.0 }
 0x1f9   :  { %v1150_v25 = vadd.f32 %v1149_v59, %v1148_v40  ;;  %v1069_v59 = vmul.f32 %v1005_v52, %v1005_v52  ;;  %v1010_v52 = vsub.f32 %v2475_v27, %v2717_v30 }
 0x1fb   :  { %v1152_v24 = vadd.f32 %v1151_v14, %v1150_v25  ;;  %v1070_v14 = vmul.f32 %v1006_v41, %v1006_v41  ;;  %v1161_v6 = vsel %vm840_vm3, %v1069_v59, 0.0  ;;  %v1011_v41 = vsub.f32 %v2481_v33, %v2717_v30 }
 0x1fd   :  { %v1154_v34 = vadd.f32 %v1153_v17, %v1152_v24  ;;  %v1071_v17 = vmul.f32 %v1007_v43, %v1007_v43  ;;  %v1163_v2 = vsel %vm840_vm3, %v1070_v14, 0.0  ;;  %v1012_v43 = vsub.f32 %v2487_v39, %v2717_v30 }
 0x1ff   :  { %v1156_v40 = vadd.f32 %v1155_v42, %v1154_v34  ;;  %v1072_v42 = vmul.f32 %v1008_v38, %v1008_v38  ;;  %v1165_v54 = vsel %vm840_vm3, %v1071_v17, 0.0  ;;  %v1013_v38 = vsub.f32 %v2493_v45, %v2717_v30 }
 0x201   :  { %v1158_v25 = vadd.f32 %v1157_v32, %v1156_v40  ;;  %v1073_v32 = vmul.f32 %v1009_v22, %v1009_v22  ;;  %v1167_v59 = vsel %vm840_vm3, %v1072_v42, 0.0  ;;  %v1014_v22 = vsub.f32 %v2499_v51, %v2717_v30 }
 0x203   :  { %v1160_v24 = vadd.f32 %v1159_v44, %v1158_v25  ;;  %v1074_v44 = vmul.f32 %v1010_v52, %v1010_v52  ;;  %v1169_v14 = vsel %vm840_vm3, %v1073_v32, 0.0  ;;  %v1015_v52 = vsub.f32 %v2505_v57, %v2717_v30 }
 0x205   :  { %v1162_v34 = vadd.f32 %v1161_v6, %v1160_v24  ;;  %v1075_v6 = vmul.f32 %v1011_v41, %v1011_v41  ;;  %v1171_v17 = vsel %vm840_vm3, %v1074_v44, 0.0  ;;  %v1016_v41 = vsub.f32 %v2511_v63, %v2717_v30 }
 0x207   :  { %v1164_v40 = vadd.f32 %v1163_v2, %v1162_v34  ;;  %v1076_v2 = vmul.f32 %v1012_v43, %v1012_v43  ;;  %v1173_v42 = vsel %vm840_vm3, %v1075_v6, 0.0  ;;  %v1017_v43 = vsub.f32 %v2517_v5, %v2717_v30 }
 0x209   :  { %v1166_v25 = vadd.f32 %v1165_v54, %v1164_v40  ;;  %v1077_v54 = vmul.f32 %v1013_v38, %v1013_v38  ;;  %v1175_v32 = vsel %vm840_vm3, %v1076_v2, 0.0  ;;  %v1018_v38 = vsub.f32 %v2523_v11, %v2717_v30 }
 0x20b   :  { %v1168_v24 = vadd.f32 %v1167_v59, %v1166_v25  ;;  %v1078_v59 = vmul.f32 %v1014_v22, %v1014_v22  ;;  %v1177_v44 = vsel %vm840_vm3, %v1077_v54, 0.0  ;;  %v1019_v22 = vsub.f32 %v2529_v21, %v2717_v30 }
 0x20d   :  { %v1170_v34 = vadd.f32 %v1169_v14, %v1168_v24  ;;  %v1079_v14 = vmul.f32 %v1015_v52, %v1015_v52  ;;  %v1179_v6 = vsel %vm840_vm3, %v1078_v59, 0.0  ;;  %v1020_v52 = vsub.f32 %v2535_v29, %v2717_v30 }
 0x20f   :  { %v1172_v40 = vadd.f32 %v1171_v17, %v1170_v34  ;;  %v1080_v17 = vmul.f32 %v1016_v41, %v1016_v41  ;;  %v1181_v2 = vsel %vm840_vm3, %v1079_v14, 0.0  ;;  %v1021_v41 = vsub.f32 %v2541_v37, %v2717_v30 }
 0x211   :  { %v1174_v25 = vadd.f32 %v1173_v42, %v1172_v40  ;;  %v1081_v42 = vmul.f32 %v1017_v43, %v1017_v43  ;;  %v1183_v54 = vsel %vm840_vm3, %v1080_v17, 0.0  ;;  %v1022_v43 = vsub.f32 %v2547_v47, %v2717_v30 }
 0x213   :  { %v1176_v24 = vadd.f32 %v1175_v32, %v1174_v25  ;;  %v1082_v32 = vmul.f32 %v1018_v38, %v1018_v38  ;;  %v1185_v59 = vsel %vm840_vm3, %v1081_v42, 0.0  ;;  %v1023_v38 = vsub.f32 %v2553_v55, %v2717_v30 }
 0x215   :  { %v1178_v34 = vadd.f32 %v1177_v44, %v1176_v24  ;;  %v1083_v44 = vmul.f32 %v1019_v22, %v1019_v22  ;;  %v1187_v14 = vsel %vm840_vm3, %v1082_v32, 0.0  ;;  %v1024_v22 = vsub.f32 %v2559_v1, %v2717_v30 }
 0x217   :  { %v1180_v40 = vadd.f32 %v1179_v6, %v1178_v34  ;;  %v1084_v6 = vmul.f32 %v1020_v52, %v1020_v52  ;;  %v1189_v17 = vsel %vm840_vm3, %v1083_v44, 0.0  ;;  %v1025_v52 = vsub.f32 %v2565_v9, %v2717_v30 }
 0x219   :  { %v1182_v25 = vadd.f32 %v1181_v2, %v1180_v40  ;;  %v1085_v2 = vmul.f32 %v1021_v41, %v1021_v41  ;;  %v1191_v42 = vsel %vm840_vm3, %v1084_v6, 0.0  ;;  %v1026_v41 = vsub.f32 %v2571_v23, %v2717_v30 }
 0x21b   :  { %v1184_v24 = vadd.f32 %v1183_v54, %v1182_v25  ;;  %v1086_v54 = vmul.f32 %v1022_v43, %v1022_v43  ;;  %v1193_v32 = vsel %vm840_vm3, %v1085_v2, 0.0  ;;  %v1027_v43 = vsub.f32 %v2577_v35, %v2717_v30 }
 0x21d   :  { %v1186_v34 = vadd.f32 %v1185_v59, %v1184_v24  ;;  %v1087_v59 = vmul.f32 %v1023_v38, %v1023_v38  ;;  %v1195_v44 = vsel %vm840_vm3, %v1086_v54, 0.0  ;;  %v1028_v38 = vsub.f32 %v2583_v49, %v2717_v30 }
 0x21f   :  { %v1188_v40 = vadd.f32 %v1187_v14, %v1186_v34  ;;  %v1088_v14 = vmul.f32 %v1024_v22, %v1024_v22  ;;  %v1197_v6 = vsel %vm840_vm3, %v1087_v59, 0.0  ;;  %v1029_v22 = vsub.f32 %v2589_v61, %v2717_v30 }
 0x221   :  { %v1190_v25 = vadd.f32 %v1189_v17, %v1188_v40  ;;  %v1089_v17 = vmul.f32 %v1025_v52, %v1025_v52  ;;  %v1199_v2 = vsel %vm840_vm3, %v1088_v14, 0.0  ;;  %v1030_v52 = vsub.f32 %v2595_v13, %v2717_v30 }
 0x223   :  { %v1192_v24 = vadd.f32 %v1191_v42, %v1190_v25  ;;  %v1090_v42 = vmul.f32 %v1026_v41, %v1026_v41  ;;  %v1201_v54 = vsel %vm840_vm3, %v1089_v17, 0.0  ;;  %v1031_v41 = vsub.f32 %v2601_v31, %v2717_v30 }
 0x225   :  { %v1194_v34 = vadd.f32 %v1193_v32, %v1192_v24  ;;  %v1091_v32 = vmul.f32 %v1027_v43, %v1027_v43  ;;  %v1203_v59 = vsel %vm840_vm3, %v1090_v42, 0.0  ;;  %v1032_v43 = vsub.f32 %v2607_v53, %v2717_v30 }
 0x227   :  { %v1196_v40 = vadd.f32 %v1195_v44, %v1194_v34  ;;  %v1092_v44 = vmul.f32 %v1028_v38, %v1028_v38  ;;  %v1205_v14 = vsel %vm840_vm3, %v1091_v32, 0.0  ;;  %v1033_v38 = vsub.f32 %v2613_v7, %v2717_v30 }
 0x228   :  { %v1096_v31 = vmul.f32 %v1032_v43, %v1032_v43  ;;  %v1037_v43 = vsub.f32 %v2637_v12, %v2717_v30 }
 0x229   :  { %v1198_v25 = vadd.f32 %v1197_v6, %v1196_v40  ;;  %v1093_v6 = vmul.f32 %v1029_v22, %v1029_v22  ;;  %v1207_v17 = vsel %vm840_vm3, %v1092_v44, 0.0  ;;  %v1097_v53 = vmul.f32 %v1033_v38, %v1033_v38 }
 0x22a   :  { %v1038_v38 = vsub.f32 %v2643_v60, %v2717_v30 }
 0x22b   :  { %v1200_v24 = vadd.f32 %v1199_v2, %v1198_v25  ;;  %v1094_v2 = vmul.f32 %v1030_v52, %v1030_v52  ;;  %v1209_v42 = vsel %vm840_vm3, %v1093_v6, 0.0  ;;  %v1215_v6 = vsel %vm840_vm3, %v1096_v31, 0.0 }
 0x22d   :  { %v1202_v34 = vadd.f32 %v1201_v54, %v1200_v24  ;;  %v1095_v54 = vmul.f32 %v1031_v41, %v1031_v41  ;;  %v1211_v32 = vsel %vm840_vm3, %v1094_v2, 0.0  ;;  %v1217_v2 = vsel %vm840_vm3, %v1097_v53, 0.0 }
 0x22f   :  { %v1204_v40 = vadd.f32 %v1203_v59, %v1202_v34  ;;  %v3845_v59 = vld [vmem:[#allocation23_spill] sm:$0xff]  ;;  %v1213_v44 = vsel %vm840_vm3, %v1095_v54, 0.0 }
 0x230   :  { %v1034_v22 = vsub.f32 %v3845_v59, %v2717_v30 }
 0x231   :  { %v1206_v25 = vadd.f32 %v1205_v14, %v1204_v40  ;;  %v3846_v14 = vld [vmem:[#allocation25_spill] sm:$0xff] }
 0x232   :  { %v1035_v52 = vsub.f32 %v3846_v14, %v2717_v30  ;;  %v1098_v7 = vmul.f32 %v1034_v22, %v1034_v22  ;;  %v1039_v22 = vsub.f32 %v2649_v48, %v2717_v30 }
 0x233   :  { %v1208_v24 = vadd.f32 %v1207_v17, %v1206_v25  ;;  %v3847_v17 = vld [vmem:[#allocation27_spill] sm:$0xff] }
 0x234   :  { %v1036_v41 = vsub.f32 %v3847_v17, %v2717_v30  ;;  %v1219_v54 = vsel %vm840_vm3, %v1098_v7, 0.0  ;;  %v1103_v53 = vmul.f32 %v1039_v22, %v1039_v22 }
 0x235   :  { %v1210_v34 = vadd.f32 %v1209_v42, %v1208_v24  ;;  %v1099_v42 = vmul.f32 %v1035_v52, %v1035_v52 }
 0x236   :  { %v1229_v7 = vsel %vm840_vm3, %v1103_v53, 0.0 }
 0x237   :  { %v1212_v40 = vadd.f32 %v1211_v32, %v1210_v34  ;;  %v1100_v32 = vmul.f32 %v1036_v41, %v1036_v41  ;;  %v1221_v31 = vsel %vm840_vm3, %v1099_v42, 0.0 }
 0x239   :  { %v1214_v25 = vadd.f32 %v1213_v44, %v1212_v40  ;;  %v1101_v44 = vmul.f32 %v1037_v43, %v1037_v43  ;;  %v1223_v52 = vsel %vm840_vm3, %v1100_v32, 0.0  ;;  %v1246_v32 = vlaneseq }
 0x23b   :  { %v1216_v24 = vadd.f32 %v1215_v6, %v1214_v25  ;;  %v1102_v6 = vmul.f32 %v1038_v38, %v1038_v38  ;;  %v1247_v22 = vshrl.u32 %v1246_v32, 7 }
 0x23d   :  { %v1218_v34 = vadd.f32 %v1217_v2, %v1216_v24  ;;  %v1225_v24 = vsel %vm840_vm3, %v1101_v44, 0.0  ;;  %v1227_v41 = vsel %vm840_vm3, %v1102_v6, 0.0  ;;  %v1248_v44 = vsub.s32 0, %v1247_v22 }
 0x23f   :  { %v1220_v40 = vadd.f32 %v1219_v54, %v1218_v34 }
 0x241   :  { %v1222_v25 = vadd.f32 %v1221_v31, %v1220_v40 }
 0x243   :  { %v1224_v12 = vadd.f32 %v1223_v52, %v1222_v25 }
 0x245   :  { %v1226_v2 = vadd.f32 %v1225_v24, %v1224_v12  ;;  %v1238_v12 = vld [vmem:[%s3739_s2] sm:$0x1]  ;;  %s2179_s2 = smov [#allocation2]  }
 0x247   :  { %v1228_v60 = vadd.f32 %v1227_v41, %v1226_v2 }
 0x249   :  { %v1230_v34 = vadd.f32 %v1229_v7, %v1228_v60  ;;  %v1242_v60 = vld [vmem:[%s3740_s3] sm:$0x1]  ;;  %s1775_s3 = sshll.u32 %s2179_s2, 4  ;;  %s3702_s3 = int_to_ptr.vmem [resolvable:$true] %s1775_s3 }
 0x24a   :  { %s2153_s5 = scalar_lea.vmem %s3702_s3, 4096  ;;  %p2158_p1 = scmp.lt.s32.totalorder %s3702_s3, %s3702_s3 }
 0x24b   :  { %v1231_v54 = vrot.slane %v1230_v34, 4  ;;  %p2154_p0 = scmp.ne.s32.totalorder %s3702_s3, %s2153_s5  ;;  %p2159_p2 = scmp.lt.s32.totalorder %s2153_s5, %s2153_s5 }
 0x24d   :  { %v1232_v17 = vadd.f32 %v1231_v54, %v1230_v34  ;;  %v3849_v34 = vld [vmem:[#allocation6_spill] sm:$0xff]  ;;  %p2160_p3 = por %p2159_p2, %p2158_p1 }
 0x24f   :  { %v1233_v43 = vrot.slane %v1232_v17, 2  ;;  %p2161_p4 = pnand %p2160_p3, %p2154_p0 }
 0x251   :  { %v1234_v14 = vadd.f32 %v1233_v43, %v1232_v17 }
 0x253   :  { %v1235_v42 = vrot.slane %v1234_v14, 1 }
 0x255   :  { %v1236_v40 = vadd.f32 %v1235_v42, %v1234_v14 }
 0x257   :  { %v1237_v38 = vmul.f32 0.001953125, %v1236_v40 }
 0x259   :  { %v1239_v31 = vadd.f32 1e-05, %v1237_v38 }
 0x25b   :  { %2151 = vrsqrt.f32 %v1239_v31 }
 0x265   :  { %v2152_v25 = vpop.eup %2151 }
 0x266   :  { %v1241_v6 = vmul.f32 %v2152_v25, %v1238_v12  ;;  %v3855_v25 = vld [vmem:[#allocation12_spill] sm:$0xff] }
 0x268   :  { %v1243_v17 = vmul.f32 %v1241_v6, %v2717_v30  ;;  %v2918_v52 = vrot.slane %v1241_v6, %v1248_v44  ;;  %v3848_v30 = vld [vmem:[#allocation5_spill] sm:$0xff] }
 0x26a   :  { %v1244_v14 = vsub.f32 %v1242_v60, %v1243_v17  ;;  %v1314_v53 = vmul.f32 %v2918_v52, %v2649_v48  ;;  %v2924_v24 = vmul.f32 %v2918_v52, %v2461_v15  ;;  %v2928_v2 = vmul.f32 %v2918_v52, %v2465_v19  ;;  %v3850_v48 = vld [vmem:[#allocation7_spill] sm:$0xff]  ;;  %v3856_v60 = vld [vmem:[#allocation13_spill] sm:$0xff] }
 0x26b   :  { %v2932_v41 = vmul.f32 %v2918_v52, %v2473_v26  ;;  %v2936_v7 = vmul.f32 %v2918_v52, %v3848_v30  ;;  %v2940_v54 = vmul.f32 %v2918_v52, %v3849_v34  ;;  %v2944_v15 = vmul.f32 %v2918_v52, %v3850_v48  ;;  %v3859_v30 = vld [vmem:[#allocation15_spill] sm:$0xff]  ;;  %v3860_v48 = vld [vmem:[#allocation16_spill] sm:$0xff] }
 0x26c   :  { %v2946_v43 = vrot.slane %v1244_v14, %v1248_v44  ;;  %v2950_v19 = vmul.f32 %v2918_v52, %v2497_v50  ;;  %v2954_v26 = vmul.f32 %v2918_v52, %v2503_v56  ;;  %v2958_v42 = vmul.f32 %v2918_v52, %v2509_v62  ;;  %v3854_v44 = vld [vmem:[#allocation11_spill] sm:$0xff]  ;;  %v3857_v14 = vld [vmem:[#allocation14_spill] sm:$0xff] }
 0x26d   :  { %v2962_v40 = vmul.f32 %v2918_v52, %v2515_v4  ;;  %v2966_v38 = vmul.f32 %v2918_v52, %v2521_v10  ;;  %v2970_v50 = vmul.f32 %v2918_v52, %v2527_v18  ;;  %v2974_v56 = vmul.f32 %v2918_v52, %v2533_v28  ;;  %v3851_v10 = vld [vmem:[#allocation8_spill] sm:$0xff]  ;;  %v3852_v18 = vld [vmem:[#allocation9_spill] sm:$0xff]  ;;  %v3853_v28 = vld [vmem:[#allocation10_spill] sm:$0xff] }
 0x26e   :  { %v1384_v31 = vadd.f32 %v2946_v43, %v1314_v53  ;;  %v2979_v62 = vmul.f32 %v2918_v52, %v2539_v36  ;;  %v2983_v4 = vmul.f32 %v2918_v52, %v2545_v46  ;;  %v2987_v32 = vmul.f32 %v2918_v52, %v3851_v10 }
 0x26f   :  { %v2991_v22 = vmul.f32 %v2918_v52, %v3852_v18  ;;  %v2995_v12 = vmul.f32 %v2918_v52, %v3853_v28  ;;  %v2999_v36 = vmul.f32 %v2918_v52, %v3854_v44  ;;  %v3003_v46 = vmul.f32 %v2918_v52, %v3855_v25  ;;  %v3861_v18 = vld [vmem:[#allocation18_spill] sm:$0xff] }
 0x270   :  { %v1448_v6 = vmax.f32 %v1384_v31, 0.0  ;;  %v3007_v17 = vmul.f32 %v2918_v52, %v3856_v60  ;;  %v3011_v53 = vmul.f32 %v2918_v52, %v3857_v14  ;;  %v3015_v34 = vmul.f32 %v2918_v52, %v3859_v30  ;;  %v3862_v31 = vld [vmem:[#allocation20_spill] sm:$0xff]  ;;  %v3863_v25 = vld [vmem:[#allocation22_spill] sm:$0xff] }
 0x271   :  { %v3019_v10 = vmul.f32 %v2918_v52, %v3860_v48  ;;  %v3023_v28 = vmul.f32 %v2918_v52, %v3861_v18  ;;  %v3027_v44 = vmul.f32 %v2918_v52, %v3862_v31  ;;  %v3031_v60 = vmul.f32 %v2918_v52, %v3863_v25 }
 0x272   :  { %3858 = vst [vmem:[#allocation26_spill] sm:$0xff] %v3011_v53  ;;  %v2019_v14 = vpack.c.bf16 %v1448_v6, %v1448_v6  ;;  %v3864_v53 = vld [vmem:[#allocation24_spill] sm:$0xff]  ;;  %v3039_v48 = vmul.f32 %v2918_v52, %v3842_v0  ;;  %v3043_v18 = vmul.f32 %v2918_v52, %v3843_v8  ;;  %v3047_v31 = vmul.f32 %v2918_v52, %v3844_v58 }
 0x273   :  { %v3035_v30 = vmul.f32 %v2918_v52, %v3864_v53  ;;  %v3051_v25 = vmul.f32 %v2918_v52, %v2647_v3  ;;  %v3055_v6 = vmul.f32 %v2918_v52, %v2463_v16  ;;  %v3059_v0 = vmul.f32 %v2918_v52, %v2467_v20  ;;  %v3868_v53 = vld [vmem:[#allocation17_spill] sm:$0xff] }
 0x274   :  { %1769 = vst.msk [vmem:[#allocation2 + $0xfc] sm:$0xf] %vm1705_vm4, %v2019_v14  ;;  %v3064_v8 = vmul.f32 %v2918_v52, %v2475_v27  ;;  %v3068_v58 = vmul.f32 %v2918_v52, %v2481_v33  ;;  %v3072_v3 = vmul.f32 %v2918_v52, %v2487_v39  ;;  %v3076_v16 = vmul.f32 %v2918_v52, %v2493_v45  ;;  %v3870_v14 = vld [vmem:[#allocation19_spill] sm:$0xff] }
 0x275   :  { %v3080_v20 = vmul.f32 %v2918_v52, %v2499_v51  ;;  %v3084_v27 = vmul.f32 %v2918_v52, %v2505_v57  ;;  %v3088_v33 = vmul.f32 %v2918_v52, %v2511_v63  ;;  %v3092_v39 = vmul.f32 %v2918_v52, %v2517_v5 }
 0x276   :  { %v3096_v45 = vmul.f32 %v2918_v52, %v2523_v11  ;;  %v3100_v51 = vmul.f32 %v2918_v52, %v2529_v21  ;;  %v3104_v57 = vmul.f32 %v2918_v52, %v2535_v29  ;;  %v3108_v63 = vmul.f32 %v2918_v52, %v2541_v37 }
 0x277   :  { %v3112_v5 = vmul.f32 %v2918_v52, %v2547_v47  ;;  %v3116_v11 = vmul.f32 %v2918_v52, %v2553_v55  ;;  %v3120_v21 = vmul.f32 %v2918_v52, %v2559_v1  ;;  %v3124_v29 = vmul.f32 %v2918_v52, %v2565_v9 }
 0x278   :  { %v3128_v37 = vmul.f32 %v2918_v52, %v2571_v23  ;;  %v3132_v47 = vmul.f32 %v2918_v52, %v2577_v35  ;;  %v3136_v55 = vmul.f32 %v2918_v52, %v2583_v49  ;;  %v3140_v1 = vmul.f32 %v2918_v52, %v2589_v61 }
 0x279   :  { %v3144_v9 = vmul.f32 %v2918_v52, %v2595_v13  ;;  %v3148_v23 = vmul.f32 %v2918_v52, %v3868_v53  ;;  %v3152_v35 = vmul.f32 %v2918_v52, %v3870_v14  ;;  %v3160_v61 = vmul.f32 %v2918_v52, %v3845_v59 }
 0x27a   :  { %3865 = vst [vmem:[#allocation28_spill] sm:$0xff] %v3132_v47  ;;  %3866 = vst [vmem:[#allocation30_spill] sm:$0xff] %v3140_v1  ;;  %v3872_v47 = vld [vmem:[#allocation21_spill] sm:$0xff]  ;;  %v3180_v59 = vadd.f32 %v2946_v43, %v2924_v24  ;;  %v3200_v24 = vadd.f32 %v2946_v43, %v2944_v15  ;;  %v3220_v15 = vadd.f32 %v2946_v43, %v2966_v38 }
 0x27b   :  { %3867 = vst [vmem:[#allocation23_spill] sm:$0xff] %v3144_v9  ;;  %3869 = vst [vmem:[#allocation5_spill] sm:$0xff] %v3148_v23  ;;  %v3156_v49 = vmul.f32 %v2918_v52, %v3872_v47  ;;  %v3873_v1 = vld [vmem:[#allocation25_spill] sm:$0xff]  ;;  %v3874_v9 = vld [vmem:[#allocation27_spill] sm:$0xff]  ;;  %v3240_v38 = vadd.f32 %v2946_v43, %v2987_v32  ;;  %v3260_v32 = vadd.f32 %v2946_v43, %v3007_v17 }
 0x27c   :  { %3871 = vst [vmem:[#allocation6_spill] sm:$0xff] %v3152_v35  ;;  %v3164_v13 = vmul.f32 %v2918_v52, %v3873_v1  ;;  %v3168_v53 = vmul.f32 %v2918_v52, %v3874_v9  ;;  %v3875_v23 = vld [vmem:[#allocation29_spill] sm:$0xff]  ;;  %v3876_v35 = vld [vmem:[#allocation31_spill] sm:$0xff]  ;;  %v3184_v1 = vadd.f32 %v2946_v43, %v2928_v2  ;;  %v3188_v9 = vadd.f32 %v2946_v43, %v2932_v41 }
 0x27d   :  { %v3172_v14 = vmul.f32 %v2918_v52, %v3875_v23  ;;  %v3176_v47 = vmul.f32 %v2918_v52, %v3876_v35  ;;  %v3192_v23 = vadd.f32 %v2946_v43, %v2936_v7  ;;  %v3196_v52 = vadd.f32 %v2946_v43, %v2940_v54  ;;  %v3877_v35 = vld [vmem:[#allocation26_spill] sm:$0xff] }
 0x27e   :  { %v3204_v2 = vadd.f32 %v2946_v43, %v2950_v19  ;;  %v3208_v41 = vadd.f32 %v2946_v43, %v2954_v26  ;;  %v3212_v7 = vadd.f32 %v2946_v43, %v2958_v42  ;;  %v3216_v54 = vadd.f32 %v2946_v43, %v2962_v40 }
 0x27f   :  { %v3224_v19 = vadd.f32 %v2946_v43, %v2970_v50  ;;  %v3228_v26 = vadd.f32 %v2946_v43, %v2974_v56  ;;  %v3232_v42 = vadd.f32 %v2946_v43, %v2979_v62  ;;  %v3236_v40 = vadd.f32 %v2946_v43, %v2983_v4 }
 0x280   :  { %v3244_v50 = vadd.f32 %v2946_v43, %v2991_v22  ;;  %v3248_v56 = vadd.f32 %v2946_v43, %v2995_v12  ;;  %v3252_v62 = vadd.f32 %v2946_v43, %v2999_v36  ;;  %v3256_v4 = vadd.f32 %v2946_v43, %v3003_v46 }
 0x281   :  { %v3264_v22 = vadd.f32 %v2946_v43, %v3877_v35  ;;  %v3268_v12 = vadd.f32 %v2946_v43, %v3015_v34  ;;  %v3272_v36 = vadd.f32 %v2946_v43, %v3019_v10  ;;  %v3276_v46 = vadd.f32 %v2946_v43, %v3023_v28 }
 0x282   :  { %v3280_v17 = vadd.f32 %v2946_v43, %v3027_v44  ;;  %v3284_v35 = vadd.f32 %v2946_v43, %v3031_v60  ;;  %v3288_v34 = vadd.f32 %v2946_v43, %v3035_v30  ;;  %v3292_v10 = vadd.f32 %v2946_v43, %v3039_v48 }
 0x283   :  { %v3296_v28 = vadd.f32 %v2946_v43, %v3043_v18  ;;  %v3300_v44 = vadd.f32 %v2946_v43, %v3047_v31  ;;  %v3304_v60 = vadd.f32 %v2946_v43, %v3051_v25  ;;  %v3308_v30 = vadd.f32 %v2946_v43, %v3055_v6 }
 0x284   :  { %v3312_v48 = vadd.f32 %v2946_v43, %v3059_v0  ;;  %v3316_v18 = vadd.f32 %v2946_v43, %v3064_v8  ;;  %v3320_v31 = vadd.f32 %v2946_v43, %v3068_v58  ;;  %v3324_v25 = vadd.f32 %v2946_v43, %v3072_v3 }
 0x285   :  { %v3328_v6 = vadd.f32 %v2946_v43, %v3076_v16  ;;  %v3332_v0 = vadd.f32 %v2946_v43, %v3080_v20  ;;  %v3336_v8 = vadd.f32 %v2946_v43, %v3084_v27  ;;  %v3340_v58 = vadd.f32 %v2946_v43, %v3088_v33 }
 0x286   :  { %3878 = vst [vmem:[#allocation7_spill] sm:$0xff] %v3324_v25  ;;  %v3344_v3 = vadd.f32 %v2946_v43, %v3092_v39  ;;  %v3348_v16 = vadd.f32 %v2946_v43, %v3096_v45  ;;  %v3352_v20 = vadd.f32 %v2946_v43, %v3100_v51  ;;  %v3356_v27 = vadd.f32 %v2946_v43, %v3104_v57 }
 0x287   :  { %3879 = vst [vmem:[#allocation8_spill] sm:$0xff] %v3328_v6  ;;  %3880 = vst [vmem:[#allocation9_spill] sm:$0xff] %v3332_v0  ;;  %v3360_v33 = vadd.f32 %v2946_v43, %v3108_v63  ;;  %v3364_v39 = vadd.f32 %v2946_v43, %v3112_v5  ;;  %v3368_v45 = vadd.f32 %v2946_v43, %v3116_v11 }
 0x288   :  { %3881 = vst [vmem:[#allocation10_spill] sm:$0xff] %v3336_v8  ;;  %v3372_v51 = vadd.f32 %v2946_v43, %v3120_v21  ;;  %v3376_v57 = vadd.f32 %v2946_v43, %v3124_v29  ;;  %v3380_v63 = vadd.f32 %v2946_v43, %v3128_v37  ;;  %v3388_v11 = vadd.f32 %v2946_v43, %v3136_v55 }
 0x289   :  { %3882 = vst [vmem:[#allocation11_spill] sm:$0xff] %v3360_v33  ;;  %3883 = vst [vmem:[#allocation12_spill] sm:$0xff] %v3364_v39  ;;  %v3888_v33 = vld [vmem:[#allocation28_spill] sm:$0xff]  ;;  %v3408_v55 = vadd.f32 %v2946_v43, %v3156_v49  ;;  %v3428_v49 = vadd.f32 %v2946_v43, %v3176_v47  ;;  %v3914_v47 = vmax.f32 %v3220_v15, 0.0 }
 0x28a   :  { %3884 = vst [vmem:[#allocation13_spill] sm:$0xff] %v3368_v45  ;;  %3885 = vst [vmem:[#allocation14_spill] sm:$0xff] %v3372_v51  ;;  %v3384_v5 = vadd.f32 %v2946_v43, %v3888_v33  ;;  %v3890_v45 = vld [vmem:[#allocation30_spill] sm:$0xff]  ;;  %v3892_v51 = vld [vmem:[#allocation23_spill] sm:$0xff] }
 0x28b   :  { %3886 = vst [vmem:[#allocation15_spill] sm:$0xff] %v3376_v57  ;;  %3887 = vst [vmem:[#allocation16_spill] sm:$0xff] %v3380_v63  ;;  %v3392_v21 = vadd.f32 %v2946_v43, %v3890_v45  ;;  %v3396_v29 = vadd.f32 %v2946_v43, %v3892_v51  ;;  %v3894_v57 = vld [vmem:[#allocation5_spill] sm:$0xff]  ;;  %v3896_v63 = vld [vmem:[#allocation6_spill] sm:$0xff]  ;;  %v3412_v45 = vadd.f32 %v2946_v43, %v3160_v61  ;;  %v1386_v61 = vmax.f32 %v3184_v1, 0.0 }
 0x28c   :  { %3889 = vst [vmem:[#allocation18_spill] sm:$0xff] %v3388_v11  ;;  %v3400_v37 = vadd.f32 %v2946_v43, %v3894_v57  ;;  %v3404_v33 = vadd.f32 %v2946_v43, %v3896_v63  ;;  %3898 = vst [vmem:[#allocation19_spill] sm:$0xff] %v3408_v55  ;;  %v3416_v51 = vadd.f32 %v2946_v43, %v3164_v13  ;;  %v1385_v55 = vmax.f32 %v3180_v59, 0.0 }
 0x28d   :  { %3891 = vst [vmem:[#allocation20_spill] sm:$0xff] %v3392_v21  ;;  %3893 = vst [vmem:[#allocation22_spill] sm:$0xff] %v3396_v29  ;;  %v3420_v57 = vadd.f32 %v2946_v43, %v3168_v53  ;;  %v3424_v63 = vadd.f32 %v2946_v43, %v3172_v14  ;;  %v1388_v13 = vmax.f32 %v3192_v23, 0.0  ;;  %v1390_v53 = vmax.f32 %v3200_v24, 0.0 }
 0x28e   :  { %3895 = vst [vmem:[#allocation24_spill] sm:$0xff] %v3400_v37  ;;  %3897 = vst [vmem:[#allocation17_spill] sm:$0xff] %v3404_v33  ;;  %v1392_v14 = vmax.f32 %v3208_v41, 0.0  ;;  %v1447_v1 = vmax.f32 %v3428_v49, 0.0  ;;  %v1956_v11 = vpack.c.bf16 %v1385_v55, %v1385_v55  ;;  %v3913_v41 = vmax.f32 %v3216_v54, 0.0 }
 0x28f   :  { %3899 = vst [vmem:[#allocation21_spill] sm:$0xff] %v3412_v45  ;;  %3900 = vst [vmem:[#allocation25_spill] sm:$0xff] %v3416_v51  ;;  %v1387_v45 = vmax.f32 %v3188_v9, 0.0  ;;  %v1389_v51 = vmax.f32 %v3196_v52, 0.0  ;;  %v1957_v9 = vpack.c.bf16 %v1386_v61, %v1386_v61  ;;  %v1959_v23 = vpack.c.bf16 %v1388_v13, %v1388_v13 }
 0x290   :  { %3901 = vst [vmem:[#allocation27_spill] sm:$0xff] %v3420_v57  ;;  %3902 = vst [vmem:[#allocation29_spill] sm:$0xff] %v3424_v63  ;;  %v1391_v57 = vmax.f32 %v3204_v2, 0.0  ;;  %v1393_v63 = vmax.f32 %v3212_v7, 0.0  ;;  %v3903_v43 = vld [vmem:[#allocation11_spill] sm:$0xff]  ;;  %v1961_v52 = vpack.c.bf16 %v1390_v53, %v1390_v53  ;;  %v1963_v24 = vpack.c.bf16 %v1392_v14, %v1392_v14 }
 0x291   :  { %v1958_v21 = vpack.c.bf16 %v1387_v45, %v1387_v45  ;;  %v1960_v29 = vpack.c.bf16 %v1389_v51, %v1389_v51  ;;  %1706 = vst.msk [vmem:[#allocation2] sm:$0xf] %vm1705_vm4, %v1956_v11  ;;  %v1965_v7 = vpack.c.bf16 %v3913_v41, %v3913_v41  ;;  %v1966_v59 = vpack.c.bf16 %v3914_v47, %v3914_v47 }
 0x292   :  { %v1962_v37 = vpack.c.bf16 %v1391_v57, %v1391_v57  ;;  %v1964_v33 = vpack.c.bf16 %v1393_v63, %v1393_v63  ;;  %v3915_v55 = vmax.f32 %v3224_v19, 0.0  ;;  %v3916_v51 = vmax.f32 %v3228_v26, 0.0  ;;  %1707 = vst.msk [vmem:[#allocation2 + $0x4] sm:$0xf] %vm1705_vm4, %v1957_v9  ;;  %1709 = vst.msk [vmem:[#allocation2 + $0xc] sm:$0xf] %vm1705_vm4, %v1959_v23 }
 0x293   :  { %v3908_v39 = vld [vmem:[#allocation19_spill] sm:$0xff]  ;;  %1708 = vst.msk [vmem:[#allocation2 + $0x8] sm:$0xf] %vm1705_vm4, %v1958_v21  ;;  %1710 = vst.msk [vmem:[#allocation2 + $0x10] sm:$0xf] %vm1705_vm4, %v1960_v29  ;;  %v3917_v54 = vmax.f32 %v3232_v42, 0.0 }
 0x294   :  { %v1442_v2 = vmax.f32 %v3908_v39, 0.0  ;;  %v1967_v45 = vpack.c.bf16 %v3915_v55, %v3915_v55  ;;  %v1968_v57 = vpack.c.bf16 %v3916_v51, %v3916_v51  ;;  %v3918_v19 = vmax.f32 %v3236_v40, 0.0  ;;  %1711 = vst.msk [vmem:[#allocation2 + $0x14] sm:$0xf] %vm1705_vm4, %v1961_v52  ;;  %1712 = vst.msk [vmem:[#allocation2 + $0x18] sm:$0xf] %vm1705_vm4, %v1962_v37 }
 0x295   :  { %v1969_v15 = vpack.c.bf16 %v3917_v54, %v3917_v54  ;;  %v3919_v26 = vmax.f32 %v3240_v38, 0.0  ;;  %v3920_v61 = vmax.f32 %v3244_v50, 0.0  ;;  %1713 = vst.msk [vmem:[#allocation2 + $0x1c] sm:$0xf] %vm1705_vm4, %v1963_v24  ;;  %1714 = vst.msk [vmem:[#allocation2 + $0x20] sm:$0xf] %vm1705_vm4, %v1964_v33 }
 0x296   :  { %v3909_v25 = vld [vmem:[#allocation21_spill] sm:$0xff]  ;;  %v1970_v11 = vpack.c.bf16 %v3918_v19, %v3918_v19  ;;  %v3921_v42 = vmax.f32 %v3248_v56, 0.0  ;;  %v3922_v38 = vmax.f32 %v3252_v62, 0.0  ;;  %v3923_v50 = vmax.f32 %v3256_v4, 0.0  ;;  %1715 = vst.msk [vmem:[#allocation2 + $0x24] sm:$0xf] %vm1705_vm4, %v1965_v7 }
 0x297   :  { %v3910_v6 = vld [vmem:[#allocation25_spill] sm:$0xff]  ;;  %v3911_v0 = vld [vmem:[#allocation27_spill] sm:$0xff]  ;;  %v1971_v63 = vpack.c.bf16 %v3919_v26, %v3919_v26  ;;  %v1972_v21 = vpack.c.bf16 %v3920_v61, %v3920_v61  ;;  %v3924_v53 = vmax.f32 %v3260_v32, 0.0  ;;  %1716 = vst.msk [vmem:[#allocation2 + $0x28] sm:$0xf] %vm1705_vm4, %v1966_v59  ;;  %v3925_v56 = vmax.f32 %v3264_v22, 0.0 }
 0x298   :  { %v3912_v8 = vld [vmem:[#allocation29_spill] sm:$0xff]  ;;  %v1973_v40 = vpack.c.bf16 %v3921_v42, %v3921_v42  ;;  %v1974_v29 = vpack.c.bf16 %v3922_v38, %v3922_v38  ;;  %v1975_v13 = vpack.c.bf16 %v3923_v50, %v3923_v50  ;;  %1717 = vst.msk [vmem:[#allocation2 + $0x2c] sm:$0xf] %vm1705_vm4, %v1967_v45  ;;  %1718 = vst.msk [vmem:[#allocation2 + $0x30] sm:$0xf] %vm1705_vm4, %v1968_v57  ;;  %v3926_v4 = vmax.f32 %v3268_v12, 0.0 }
 0x299   :  { %v1976_v37 = vpack.c.bf16 %v3924_v53, %v3924_v53  ;;  %v1977_v62 = vpack.c.bf16 %v3925_v56, %v3925_v56  ;;  %v3927_v32 = vmax.f32 %v3272_v36, 0.0  ;;  %v3928_v47 = vmax.f32 %v3276_v46, 0.0  ;;  %1719 = vst.msk [vmem:[#allocation2 + $0x34] sm:$0xf] %vm1705_vm4, %v1969_v15  ;;  %1720 = vst.msk [vmem:[#allocation2 + $0x38] sm:$0xf] %vm1705_vm4, %v1970_v11 }
 0x29a   :  { %v1978_v33 = vpack.c.bf16 %v3926_v4, %v3926_v4  ;;  %1721 = vst.msk [vmem:[#allocation2 + $0x3c] sm:$0xf] %vm1705_vm4, %v1971_v63  ;;  %1722 = vst.msk [vmem:[#allocation2 + $0x40] sm:$0xf] %vm1705_vm4, %v1972_v21  ;;  %v3929_v22 = vmax.f32 %v3280_v17, 0.0  ;;  %v3930_v36 = vmax.f32 %v3284_v35, 0.0 }
 0x29b   :  { %v1979_v14 = vpack.c.bf16 %v3927_v32, %v3927_v32  ;;  %v1980_v59 = vpack.c.bf16 %v3928_v47, %v3928_v47  ;;  %v3931_v46 = vmax.f32 %v3288_v34, 0.0  ;;  %v3932_v52 = vmax.f32 %v3292_v10, 0.0  ;;  %1723 = vst.msk [vmem:[#allocation2 + $0x44] sm:$0xf] %vm1705_vm4, %v1973_v40  ;;  %1724 = vst.msk [vmem:[#allocation2 + $0x48] sm:$0xf] %vm1705_vm4, %v1974_v29 }
 0x29c   :  { %v1981_v12 = vpack.c.bf16 %v3929_v22, %v3929_v22  ;;  %v1982_v9 = vpack.c.bf16 %v3930_v36, %v3930_v36  ;;  %1725 = vst.msk [vmem:[#allocation2 + $0x4c] sm:$0xf] %vm1705_vm4, %v1975_v13  ;;  %1726 = vst.msk [vmem:[#allocation2 + $0x50] sm:$0xf] %vm1705_vm4, %v1976_v37  ;;  %v3933_v17 = vmax.f32 %v3296_v28, 0.0  ;;  %v3934_v34 = vmax.f32 %v3300_v44, 0.0 }
 0x29d   :  { %v1983_v23 = vpack.c.bf16 %v3931_v46, %v3931_v46  ;;  %v1984_v24 = vpack.c.bf16 %v3932_v52, %v3932_v52  ;;  %v3935_v10 = vmax.f32 %v3304_v60, 0.0  ;;  %v3936_v55 = vmax.f32 %v3308_v30, 0.0  ;;  %1727 = vst.msk [vmem:[#allocation2 + $0x54] sm:$0xf] %vm1705_vm4, %v1977_v62  ;;  %1728 = vst.msk [vmem:[#allocation2 + $0x58] sm:$0xf] %vm1705_vm4, %v1978_v33 }
 0x29e   :  { %v1985_v35 = vpack.c.bf16 %v3933_v17, %v3933_v17  ;;  %v1986_v41 = vpack.c.bf16 %v3934_v34, %v3934_v34  ;;  %1729 = vst.msk [vmem:[#allocation2 + $0x5c] sm:$0xf] %vm1705_vm4, %v1979_v14  ;;  %1730 = vst.msk [vmem:[#allocation2 + $0x60] sm:$0xf] %vm1705_vm4, %v1980_v59  ;;  %v3937_v28 = vmax.f32 %v3312_v48, 0.0  ;;  %v3938_v60 = vmax.f32 %v3316_v18, 0.0 }
 0x29f   :  { %v1987_v7 = vpack.c.bf16 %v3935_v10, %v3935_v10  ;;  %v1988_v45 = vpack.c.bf16 %v3936_v55, %v3936_v55  ;;  %v3939_v30 = vmax.f32 %v3320_v31, 0.0  ;;  %v3940_v54 = vld [vmem:[#allocation7_spill] sm:$0xff]  ;;  %1731 = vst.msk [vmem:[#allocation2 + $0x64] sm:$0xf] %vm1705_vm4, %v1981_v12  ;;  %1732 = vst.msk [vmem:[#allocation2 + $0x68] sm:$0xf] %vm1705_vm4, %v1982_v9 }
 0x2a0   :  { %v1989_v44 = vpack.c.bf16 %v3937_v28, %v3937_v28  ;;  %v1990_v51 = vpack.c.bf16 %v3938_v60, %v3938_v60  ;;  %v3941_v15 = vmax.f32 %v3940_v54, 0.0  ;;  %1733 = vst.msk [vmem:[#allocation2 + $0x6c] sm:$0xf] %vm1705_vm4, %v1983_v23  ;;  %1734 = vst.msk [vmem:[#allocation2 + $0x70] sm:$0xf] %vm1705_vm4, %v1984_v24  ;;  %v3942_v48 = vld [vmem:[#allocation8_spill] sm:$0xff]  ;;  %v2013_v54 = vpack.c.bf16 %v1442_v2, %v1442_v2 }
 0x2a1   :  { %v1991_v57 = vpack.c.bf16 %v3939_v30, %v3939_v30  ;;  %v3943_v18 = vmax.f32 %v3942_v48, 0.0  ;;  %v3944_v26 = vld [vmem:[#allocation9_spill] sm:$0xff]  ;;  %v3946_v61 = vld [vmem:[#allocation10_spill] sm:$0xff]  ;;  %v3948_v40 = vmax.f32 %v3340_v58, 0.0  ;;  %1735 = vst.msk [vmem:[#allocation2 + $0x74] sm:$0xf] %vm1705_vm4, %v1985_v35 }
 0x2a2   :  { %v1992_v19 = vpack.c.bf16 %v3941_v15, %v3941_v15  ;;  %v3945_v31 = vmax.f32 %v3944_v26, 0.0  ;;  %v3947_v21 = vmax.f32 %v3946_v61, 0.0  ;;  %1736 = vst.msk [vmem:[#allocation2 + $0x78] sm:$0xf] %vm1705_vm4, %v1986_v41  ;;  %1737 = vst.msk [vmem:[#allocation2 + $0x7c] sm:$0xf] %vm1705_vm4, %v1987_v7 }
 0x2a3   :  { %v1993_v11 = vpack.c.bf16 %v3943_v18, %v3943_v18  ;;  %v1996_v38 = vpack.c.bf16 %v3948_v40, %v3948_v40  ;;  %1738 = vst.msk [vmem:[#allocation2 + $0x80] sm:$0xf] %vm1705_vm4, %v1988_v45  ;;  %v3949_v29 = vmax.f32 %v3344_v3, 0.0  ;;  %v3950_v13 = vmax.f32 %v3348_v16, 0.0  ;;  %1739 = vst.msk [vmem:[#allocation2 + $0x84] sm:$0xf] %vm1705_vm4, %v1989_v44 }
 0x2a4   :  { %v1994_v63 = vpack.c.bf16 %v3945_v31, %v3945_v31  ;;  %v1995_v42 = vpack.c.bf16 %v3947_v21, %v3947_v21  ;;  %v3951_v58 = vmax.f32 %v3352_v20, 0.0  ;;  %v3952_v56 = vmax.f32 %v3356_v27, 0.0  ;;  %1740 = vst.msk [vmem:[#allocation2 + $0x88] sm:$0xf] %vm1705_vm4, %v1990_v51  ;;  %1741 = vst.msk [vmem:[#allocation2 + $0x8c] sm:$0xf] %vm1705_vm4, %v1991_v57 }
 0x2a5   :  { %v1997_v50 = vpack.c.bf16 %v3949_v29, %v3949_v29  ;;  %v1998_v53 = vpack.c.bf16 %v3950_v13, %v3950_v13  ;;  %1742 = vst.msk [vmem:[#allocation2 + $0x90] sm:$0xf] %vm1705_vm4, %v1992_v19  ;;  %v3953_v3 = vmax.f32 %v3903_v43, 0.0  ;;  %v3954_v4 = vld [vmem:[#allocation12_spill] sm:$0xff]  ;;  %v3956_v32 = vld [vmem:[#allocation13_spill] sm:$0xff]  ;;  %v3958_v47 = vld [vmem:[#allocation14_spill] sm:$0xff] }
 0x2a6   :  { %v1999_v37 = vpack.c.bf16 %v3951_v58, %v3951_v58  ;;  %v2000_v62 = vpack.c.bf16 %v3952_v56, %v3952_v56  ;;  %v3955_v20 = vmax.f32 %v3954_v4, 0.0  ;;  %v3957_v27 = vmax.f32 %v3956_v32, 0.0  ;;  %1743 = vst.msk [vmem:[#allocation2 + $0x94] sm:$0xf] %vm1705_vm4, %v1993_v11  ;;  %1744 = vst.msk [vmem:[#allocation2 + $0x98] sm:$0xf] %vm1705_vm4, %v1994_v63 }
 0x2a7   :  { %v2001_v16 = vpack.c.bf16 %v3953_v3, %v3953_v3  ;;  %v3959_v59 = vmax.f32 %v3958_v47, 0.0  ;;  %1745 = vst.msk [vmem:[#allocation2 + $0x9c] sm:$0xf] %vm1705_vm4, %v1995_v42  ;;  %1746 = vst.msk [vmem:[#allocation2 + $0xa0] sm:$0xf] %vm1705_vm4, %v1996_v38  ;;  %v3960_v43 = vld [vmem:[#allocation15_spill] sm:$0xff] }
 0x2a8   :  { %v2002_v33 = vpack.c.bf16 %v3955_v20, %v3955_v20  ;;  %v2003_v14 = vpack.c.bf16 %v3957_v27, %v3957_v27  ;;  %v3961_v12 = vmax.f32 %v3960_v43, 0.0  ;;  %v3962_v9 = vld [vmem:[#allocation16_spill] sm:$0xff]  ;;  %v3964_v52 = vmax.f32 %v3384_v5, 0.0  ;;  %v3965_v17 = vld [vmem:[#allocation18_spill] sm:$0xff]  ;;  %1747 = vst.msk [vmem:[#allocation2 + $0xa4] sm:$0xf] %vm1705_vm4, %v1997_v50 }
 0x2a9   :  { %v2004_v22 = vpack.c.bf16 %v3959_v59, %v3959_v59  ;;  %v3963_v46 = vmax.f32 %v3962_v9, 0.0  ;;  %v3966_v35 = vmax.f32 %v3965_v17, 0.0  ;;  %1748 = vst.msk [vmem:[#allocation2 + $0xa8] sm:$0xf] %vm1705_vm4, %v1998_v53  ;;  %1749 = vst.msk [vmem:[#allocation2 + $0xac] sm:$0xf] %vm1705_vm4, %v1999_v37 }
 0x2aa   :  { %v2005_v36 = vpack.c.bf16 %v3961_v12, %v3961_v12  ;;  %v2007_v24 = vpack.c.bf16 %v3964_v52, %v3964_v52  ;;  %1750 = vst.msk [vmem:[#allocation2 + $0xb0] sm:$0xf] %vm1705_vm4, %v2000_v62  ;;  %v3967_v41 = vld [vmem:[#allocation20_spill] sm:$0xff]  ;;  %v3969_v55 = vld [vmem:[#allocation22_spill] sm:$0xff]  ;;  %v3973_v51 = vld [vmem:[#allocation17_spill] sm:$0xff]  ;;  %v3975_v15 = vmax.f32 %v3909_v25, 0.0 }
 0x2ab   :  { %v2006_v23 = vpack.c.bf16 %v3963_v46, %v3963_v46  ;;  %v2008_v34 = vpack.c.bf16 %v3966_v35, %v3966_v35  ;;  %v3968_v10 = vmax.f32 %v3967_v41, 0.0  ;;  %v3970_v5 = vmax.f32 %v3969_v55, 0.0  ;;  %v3971_v28 = vld [vmem:[#allocation24_spill] sm:$0xff]  ;;  %1751 = vst.msk [vmem:[#allocation2 + $0xb4] sm:$0xf] %vm1705_vm4, %v2001_v16 }
 0x2ac   :  { %v3972_v44 = vmax.f32 %v3971_v28, 0.0  ;;  %v3974_v30 = vmax.f32 %v3973_v51, 0.0  ;;  %1752 = vst.msk [vmem:[#allocation2 + $0xb8] sm:$0xf] %vm1705_vm4, %v2002_v33  ;;  %1753 = vst.msk [vmem:[#allocation2 + $0xbc] sm:$0xf] %vm1705_vm4, %v2003_v14  ;;  %v2014_v19 = vpack.c.bf16 %v3975_v15, %v3975_v15 }
 0x2ad   :  { %v2009_v7 = vpack.c.bf16 %v3968_v10, %v3968_v10  ;;  %v2010_v45 = vpack.c.bf16 %v3970_v5, %v3970_v5  ;;  %1754 = vst.msk [vmem:[#allocation2 + $0xc0] sm:$0xf] %vm1705_vm4, %v2004_v22  ;;  %v3976_v48 = vmax.f32 %v3910_v6, 0.0  ;;  %v3977_v11 = vmax.f32 %v3911_v0, 0.0  ;;  %1755 = vst.msk [vmem:[#allocation2 + $0xc4] sm:$0xf] %vm1705_vm4, %v2005_v36 }
 0x2ae   :  { %v2011_v60 = vpack.c.bf16 %v3972_v44, %v3972_v44  ;;  %v2012_v57 = vpack.c.bf16 %v3974_v30, %v3974_v30  ;;  %1756 = vst.msk [vmem:[#allocation2 + $0xc8] sm:$0xf] %vm1705_vm4, %v2006_v23  ;;  %1757 = vst.msk [vmem:[#allocation2 + $0xcc] sm:$0xf] %vm1705_vm4, %v2007_v24  ;;  %v3978_v25 = vmax.f32 %v3912_v8, 0.0  ;;  %v2018_v0 = vpack.c.bf16 %v1447_v1, %v1447_v1 }
 0x2af   :  { %v2015_v18 = vpack.c.bf16 %v3976_v48, %v3976_v48  ;;  %v2016_v26 = vpack.c.bf16 %v3977_v11, %v3977_v11  ;;  %1758 = vst.msk [vmem:[#allocation2 + $0xd0] sm:$0xf] %vm1705_vm4, %v2008_v34  ;;  %1759 = vst.msk [vmem:[#allocation2 + $0xd4] sm:$0xf] %vm1705_vm4, %v2009_v7 }
 0x2b0   :  { %v2017_v6 = vpack.c.bf16 %v3978_v25, %v3978_v25  ;;  %1760 = vst.msk [vmem:[#allocation2 + $0xd8] sm:$0xf] %vm1705_vm4, %v2010_v45  ;;  %1761 = vst.msk [vmem:[#allocation2 + $0xdc] sm:$0xf] %vm1705_vm4, %v2011_v60 }
 0x2b1   :  { %1762 = vst.msk [vmem:[#allocation2 + $0xe0] sm:$0xf] %vm1705_vm4, %v2012_v57  ;;  %1763 = vst.msk [vmem:[#allocation2 + $0xe4] sm:$0xf] %vm1705_vm4, %v2013_v54 }
 0x2b2   :  { %1764 = vst.msk [vmem:[#allocation2 + $0xe8] sm:$0xf] %vm1705_vm4, %v2014_v19  ;;  %1765 = vst.msk [vmem:[#allocation2 + $0xec] sm:$0xf] %vm1705_vm4, %v2015_v18 }
 0x2b3   :  { %1766 = vst.msk [vmem:[#allocation2 + $0xf0] sm:$0xf] %vm1705_vm4, %v2016_v26  ;;  %1767 = vst.msk [vmem:[#allocation2 + $0xf4] sm:$0xf] %vm1705_vm4, %v2017_v6 }
 0x2b4   :  { %1768 = vst.msk [vmem:[#allocation2 + $0xf8] sm:$0xf] %vm1705_vm4, %v2018_v0 }
 0x2b5   :  { %2164 = shalt.err (!%p2161_p4)
}
 0x2b6   :  { %s2165_s8 = scalar_lea.hbm %s3741_s4, 4096 }
 0x2b7   :  { %p2166_p5 = scmp.ne.s32.totalorder %s3741_s4, %s2165_s8  ;;  %p2169_p6 = scmp.lt.u32.totalorder %s2165_s8, %s3741_s4 }
 0x2b9   :  { %p2171_p7 = pnand %p2169_p6, %p2166_p5 }
 0x2bb   :  { %2174 = shalt.err (!%p2171_p7)
}
 0x2bc   :  { %s2180_s13 = smov 64   ;;  %s2181_s14 = smov 4  }
 0x2bd   :  { %1781 = dma.vmem_to_hbm [thread:$0]  %s3702_s3, 4096, %s3741_s4, [#allocation3], %s2180_s13, %s2180_s13, %s2181_s14  }
 0x2be   :  { %2175 = dma.done.wait [#allocation3], 4096  }
 0x2bf   :  { %2176 = vsyncadd [#allocation3], 4294963200 }
 0x2c0   :  { %1785 = vsyncpa [#allocation3], 1 }

</bundles_post_ra>
